<compile_context>
chip_gen: v7x
topology: tpu7x:2x2x1
jax: 0.10.0
libtpu: 0.0.40
codegen_flags: <defaults>
</compile_context>

<pallas_src>
import functools
import math

import jax
import jax.numpy as jnp
from jax import lax
from jax.experimental import pallas as pl
from jax.experimental.pallas import tpu as pltpu

LN_EPS = 1e-6


def _layernorm(x, w, b):
    mu = jnp.mean(x, axis=-1, keepdims=True)
    var = jnp.mean((x - mu) ** 2, axis=-1, keepdims=True)
    return (x - mu) * lax.rsqrt(var + LN_EPS) * w + b


def _gelu_exact(x):
    # torch.nn.GELU default ("none" approximation): 0.5*x*(1+erf(x/sqrt(2)))
    return 0.5 * x * (1.0 + lax.erf(x * (1.0 / math.sqrt(2.0))))


def encoder_block_kernel(
    x_ref,            # (Bt, S, D)
    ln1_w, ln1_b,     # (1, D) f32
    wqkv, bqkv,       # (D, 3D) cd (Q-scale pre-folded), (1, 3D) f32
    wo, bo,           # (D, D) cd, (1, D) f32
    ln2_w, ln2_b,     # (1, D) f32
    w1, b1,           # (D, M) cd, (1, M) f32
    w2, b2,           # (M, D) cd, (1, D) f32
    o_ref,            # (Bt, S, D)
    attn_sc,          # VMEM scratch (Bt, S, D) cd
    *, num_heads, compute_dtype,
):
    bt, S, D = x_ref.shape
    H = num_heads
    hd = D // H
    rows = bt * S
    cd = compute_dtype
    approx_recip = jnp.dtype(cd) != jnp.dtype(jnp.float32)

    x = x_ref[...].astype(jnp.float32).reshape(rows, D)     # fold batch tile into rows

    # ---- LN1 (f32) ----
    h = _layernorm(x, ln1_w[0], ln1_b[0])

    # ---- QKV in-projection (compute_dtype MXU, f32 accumulation) ----
    # 1/sqrt(hd) is already folded into the Q columns of wqkv / bqkv.
    qkv = jnp.dot(h.astype(cd), wqkv[...], preferred_element_type=jnp.float32) + bqkv[0]

    q = qkv[:, :D].reshape(bt, S, D).astype(cd)
    k = qkv[:, D:2 * D].reshape(bt, S, D).astype(cd)
    v = qkv[:, 2 * D:].reshape(bt, S, D).astype(cd)

    # Batched (over the batch tile) dot_generals; contraction on the last dims
    # avoids materializing any transpose of K.
    dn_qk = (((2,), (2,)), ((0,), (0,)))   # (Bt,S,hd) x (Bt,S,hd) -> (Bt,S,S)
    dn_pv = (((2,), (1,)), ((0,), (0,)))   # (Bt,S,S)  x (Bt,S,hd) -> (Bt,S,hd)

    for hidx in range(H):                  # static loop over heads (H is small)
        sl = slice(hidx * hd, (hidx + 1) * hd)
        s = lax.dot_general(q[:, :, sl], k[:, :, sl], dn_qk,
                            preferred_element_type=jnp.float32)      # (Bt, S, S)
        s = s - jnp.max(s, axis=-1, keepdims=True)
        p = jnp.exp(s)
        p = p * pl.reciprocal(jnp.sum(p, axis=-1, keepdims=True), approx=approx_recip)
        o_h = lax.dot_general(p.astype(cd), v[:, :, sl], dn_pv,
                              preferred_element_type=jnp.float32)    # (Bt, S, hd)
        attn_sc[:, :, sl] = o_h.astype(cd)  # write head output into its lane slice

    attn = attn_sc[...].reshape(rows, D)
    attn = jnp.dot(attn, wo[...], preferred_element_type=jnp.float32) + bo[0]

    # dropout(p) is identity in eval mode
    x2 = attn + x                           # residual 1

    # ---- LN2 + MLP ----
    y = _layernorm(x2, ln2_w[0], ln2_b[0])
    y = jnp.dot(y.astype(cd), w1[...], preferred_element_type=jnp.float32) + b1[0]
    y = _gelu_exact(y)
    y = jnp.dot(y.astype(cd), w2[...], preferred_element_type=jnp.float32) + b2[0]

    o_ref[...] = (x2 + y).reshape(bt, S, D).astype(o_ref.dtype)


def _pick_batch_block(B, S, target_rows=256):
    """Largest divisor of B whose block gives ~target_rows (>=128) MXU rows."""
    bt = max(1, min(B, max(1, target_rows // max(1, S))))
    while B % bt != 0:
        bt -= 1
    return bt


def encoder_block(x, params, num_heads, *, compute_dtype=jnp.bfloat16):
    """x: (B, S, D). params: dict of pre-transposed f32 weights."""
    B, S, D = x.shape
    assert D % num_heads == 0
    hd = D // num_heads
    cd = jnp.dtype(compute_dtype)

    # Fold the attention scale 1/sqrt(hd) into the Q columns of the in-projection.
    scale = 1.0 / math.sqrt(hd)
    col_scale = jnp.concatenate(
        [jnp.full((D,), scale, jnp.float32), jnp.ones((2 * D,), jnp.float32)])[None, :]
    wqkv = (params["wqkv"] * col_scale).astype(cd)
    bqkv = params["bqkv"] * col_scale
    wo = params["wo"].astype(cd)
    w1 = params["w1"].astype(cd)
    w2 = params["w2"].astype(cd)

    weights = [
        params["ln1_w"], params["ln1_b"],
        wqkv, bqkv,
        wo, params["bo"],
        params["ln2_w"], params["ln2_b"],
        w1, params["b1"],
        w2, params["b2"],
    ]

    bt = _pick_batch_block(B, S)
    grid = (B // bt,)

    x_spec = pl.BlockSpec((bt, S, D), lambda b: (b, 0, 0))
    # Whole weight array resident in VMEM, single-buffered (no per-step pipelining).
    w_spec = pl.BlockSpec(memory_space=pltpu.MemorySpace.VMEM)

    return pl.pallas_call(
        functools.partial(encoder_block_kernel, num_heads=num_heads, compute_dtype=cd),
        out_shape=jax.ShapeDtypeStruct((B, S, D), x.dtype),
        grid_spec=pltpu.PrefetchScalarGridSpec(
            num_scalar_prefetch=0,
            grid=grid,
            in_specs=[x_spec] + [w_spec] * len(weights),
            out_specs=pl.BlockSpec((bt, S, D), lambda b: (b, 0, 0)),
            scratch_shapes=[pltpu.VMEM((bt, S, D), cd)],
        ),
        compiler_params=pltpu.CompilerParams(
            dimension_semantics=("parallel",),
            vmem_limit_bytes=64 * 1024 * 1024,   # explicit scoped-VMEM budget
        ),
    )(x, *weights)


def init_params(key, hidden_dim, mlp_dim):
    """Deterministic synthetic parameter init (shapes match nn.MultiheadAttention + MLPBlock)."""
    ks = jax.random.split(key, 8)
    D, M = hidden_dim, mlp_dim

    def xavier(k, shape):
        fan_in, fan_out = shape[1], shape[0]
        bound = math.sqrt(6.0 / (fan_in + fan_out))
        return jax.random.uniform(k, shape, jnp.float32, -bound, bound)

    # PyTorch-shaped weights (out_features, in_features), then transposed for x @ W.
    in_proj_w = xavier(ks[0], (3 * D, D))
    in_proj_b = jax.random.normal(ks[1], (3 * D,), jnp.float32) * 0.02
    out_proj_w = xavier(ks[2], (D, D))
    out_proj_b = jax.random.normal(ks[3], (D,), jnp.float32) * 0.02
    lin1_w = xavier(ks[4], (M, D))
    lin1_b = jax.random.normal(ks[5], (M,), jnp.float32) * 1e-6
    lin2_w = xavier(ks[6], (D, M))
    lin2_b = jax.random.normal(ks[7], (D,), jnp.float32) * 1e-6

    return {
        "ln1_w": jnp.ones((1, D), jnp.float32),
        "ln1_b": jnp.zeros((1, D), jnp.float32),
        "wqkv": in_proj_w.T,                      # (D, 3D)
        "bqkv": in_proj_b.reshape(1, 3 * D),
        "wo": out_proj_w.T,                       # (D, D)
        "bo": out_proj_b.reshape(1, D),
        "ln2_w": jnp.ones((1, D), jnp.float32),
        "ln2_b": jnp.zeros((1, D), jnp.float32),
        "w1": lin1_w.T,                           # (D, M)
        "b1": lin1_b.reshape(1, M),
        "w2": lin2_w.T,                           # (M, D)
        "b2": lin2_b.reshape(1, D),
    }


def encoder_block_ref(x, p, num_heads):
    """Pure-JAX f32 reference for correctness check."""
    B, S, D = x.shape
    hd = D // num_heads

    def ln(v, w, b):
        mu = jnp.mean(v, -1, keepdims=True)
        var = jnp.mean((v - mu) ** 2, -1, keepdims=True)
        return (v - mu) / jnp.sqrt(var + LN_EPS) * w + b

    h = ln(x, p["ln1_w"][0], p["ln1_b"][0])
    qkv = h @ p["wqkv"] + p["bqkv"][0]
    q, k, v = jnp.split(qkv, 3, axis=-1)
    q = q.reshape(B, S, num_heads, hd).transpose(0, 2, 1, 3)
    k = k.reshape(B, S, num_heads, hd).transpose(0, 2, 1, 3)
    v = v.reshape(B, S, num_heads, hd).transpose(0, 2, 1, 3)
    s = jnp.einsum("bhqd,bhkd->bhqk", q, k) / math.sqrt(hd)
    a = jax.nn.softmax(s, axis=-1)
    o = jnp.einsum("bhqk,bhkd->bhqd", a, v).transpose(0, 2, 1, 3).reshape(B, S, D)
    o = o @ p["wo"] + p["bo"][0]
    x2 = o + x
    y = ln(x2, p["ln2_w"][0], p["ln2_b"][0])
    y = jax.nn.gelu(y @ p["w1"] + p["b1"][0], approximate=False)
    y = y @ p["w2"] + p["b2"][0]
    return x2 + y


if __name__ == "__main__":
    B, S, D = 2, 8, 32
    num_heads = 4
    mlp_dim = 64

    key = jax.random.PRNGKey(0)
    kx, kp = jax.random.split(key)
    x = jax.random.normal(kx, (B, S, D), jnp.float32)
    params = init_params(kp, D, mlp_dim)

    ref = encoder_block_ref(x, params, num_heads)

    # f32 compute path: tight semantic check.
    out_f32 = jax.block_until_ready(
        encoder_block(x, params, num_heads, compute_dtype=jnp.float32))
    assert jnp.allclose(out_f32, ref, rtol=2e-3, atol=2e-3), "f32 kernel mismatch vs reference"

    # bf16 matmul path (default fast path): looser tolerance vs. f32 reference.
    out_bf16 = jax.block_until_ready(encoder_block(x, params, num_heads))
    assert jnp.allclose(out_bf16, ref, rtol=5e-2, atol=5e-2), "bf16 kernel mismatch vs reference"

    print("KERNEL_OK")
</pallas_src>

<mosaic_0001>
module attributes {stable_mosaic.version = 11 : i64} {
  func.func @encoder_block_kernel(%arg0: i32, %arg1: memref<2x8x32xf32, #tpu.memory_space<vmem>>, %arg2: memref<1x32xf32, #tpu.memory_space<vmem>>, %arg3: memref<1x32xf32, #tpu.memory_space<vmem>>, %arg4: memref<32x96xf32, #tpu.memory_space<vmem>>, %arg5: memref<1x96xf32, #tpu.memory_space<vmem>>, %arg6: memref<32x32xf32, #tpu.memory_space<vmem>>, %arg7: memref<1x32xf32, #tpu.memory_space<vmem>>, %arg8: memref<1x32xf32, #tpu.memory_space<vmem>>, %arg9: memref<1x32xf32, #tpu.memory_space<vmem>>, %arg10: memref<32x64xf32, #tpu.memory_space<vmem>>, %arg11: memref<1x64xf32, #tpu.memory_space<vmem>>, %arg12: memref<64x32xf32, #tpu.memory_space<vmem>>, %arg13: memref<1x32xf32, #tpu.memory_space<vmem>>, %arg14: memref<2x8x32xf32, #tpu.memory_space<vmem>>, %arg15: memref<2x8x32xf32, #tpu.memory_space<vmem>>) attributes {dimension_semantics = [#tpu.dimension_semantics<parallel>], iteration_bounds = array<i64: 1>, scalar_prefetch = 0 : i64, scratch_operands = 1 : i64, tpu.core_type = #tpu.core_type<tc>, window_params = [{transform_indices = @transform_0, window_bounds = array<i64: 2, 8, 32>}, {pipeline_mode = #tpu.pipeline_mode<synchronous>, transform_indices = @transform_1, window_bounds = array<i64: 1, 32>}, {pipeline_mode = #tpu.pipeline_mode<synchronous>, transform_indices = @transform_2, window_bounds = array<i64: 1, 32>}, {pipeline_mode = #tpu.pipeline_mode<synchronous>, transform_indices = @transform_3, window_bounds = array<i64: 32, 96>}, {pipeline_mode = #tpu.pipeline_mode<synchronous>, transform_indices = @transform_4, window_bounds = array<i64: 1, 96>}, {pipeline_mode = #tpu.pipeline_mode<synchronous>, transform_indices = @transform_5, window_bounds = array<i64: 32, 32>}, {pipeline_mode = #tpu.pipeline_mode<synchronous>, transform_indices = @transform_6, window_bounds = array<i64: 1, 32>}, {pipeline_mode = #tpu.pipeline_mode<synchronous>, transform_indices = @transform_7, window_bounds = array<i64: 1, 32>}, {pipeline_mode = #tpu.pipeline_mode<synchronous>, transform_indices = @transform_8, window_bounds = array<i64: 1, 32>}, {pipeline_mode = #tpu.pipeline_mode<synchronous>, transform_indices = @transform_9, window_bounds = array<i64: 32, 64>}, {pipeline_mode = #tpu.pipeline_mode<synchronous>, transform_indices = @transform_10, window_bounds = array<i64: 1, 64>}, {pipeline_mode = #tpu.pipeline_mode<synchronous>, transform_indices = @transform_11, window_bounds = array<i64: 64, 32>}, {pipeline_mode = #tpu.pipeline_mode<synchronous>, transform_indices = @transform_12, window_bounds = array<i64: 1, 32>}, {transform_indices = @transform_13, window_bounds = array<i64: 2, 8, 32>}]} {
    %c0 = arith.constant 0 : index
    %c0_0 = arith.constant 0 : index
    %c0_1 = arith.constant 0 : index
    %0 = vector.load %arg1[%c0, %c0_0, %c0_1] : memref<2x8x32xf32, #tpu.memory_space<vmem>>, vector<2x8x32xf32>
    %1 = vector.shape_cast %0 : vector<2x8x32xf32> to vector<16x32xf32>
    %c0_2 = arith.constant 0 : index
    %c0_3 = arith.constant 0 : index
    %2 = vector.load %arg2[%c0_2, %c0_3] : memref<1x32xf32, #tpu.memory_space<vmem>>, vector<1x32xf32>
    %3 = vector.shape_cast %2 : vector<1x32xf32> to vector<32xf32>
    %c0_4 = arith.constant 0 : index
    %c0_5 = arith.constant 0 : index
    %4 = vector.load %arg3[%c0_4, %c0_5] : memref<1x32xf32, #tpu.memory_space<vmem>>, vector<1x32xf32>
    %5 = vector.shape_cast %4 : vector<1x32xf32> to vector<32xf32>
    %cst = arith.constant dense<0.000000e+00> : vector<16xf32>
    %6 = vector.multi_reduction <add>, %1, %cst [1] : vector<16x32xf32> to vector<16xf32>
    %7 = vector.shape_cast %6 : vector<16xf32> to vector<16x1xf32>
    %cst_6 = arith.constant 3.200000e+01 : f32
    %8 = vector.broadcast %cst_6 : f32 to vector<16x1xf32>
    %9 = arith.divf %7, %8 : vector<16x1xf32>
    %10 = vector.broadcast %9 : vector<16x1xf32> to vector<16x32xf32>
    %11 = arith.subf %1, %10 : vector<16x32xf32>
    %12 = arith.mulf %11, %11 : vector<16x32xf32>
    %cst_7 = arith.constant dense<0.000000e+00> : vector<16xf32>
    %13 = vector.multi_reduction <add>, %12, %cst_7 [1] : vector<16x32xf32> to vector<16xf32>
    %14 = vector.shape_cast %13 : vector<16xf32> to vector<16x1xf32>
    %cst_8 = arith.constant 3.200000e+01 : f32
    %15 = vector.broadcast %cst_8 : f32 to vector<16x1xf32>
    %16 = arith.divf %14, %15 : vector<16x1xf32>
    %17 = vector.broadcast %9 : vector<16x1xf32> to vector<16x32xf32>
    %18 = arith.subf %1, %17 : vector<16x32xf32>
    %cst_9 = arith.constant 9.99999997E-7 : f32
    %19 = vector.broadcast %cst_9 : f32 to vector<16x1xf32>
    %20 = arith.addf %16, %19 : vector<16x1xf32>
    %21 = math.rsqrt %20 : vector<16x1xf32>
    %22 = vector.broadcast %21 : vector<16x1xf32> to vector<16x32xf32>
    %23 = arith.mulf %18, %22 : vector<16x32xf32>
    %24 = vector.shape_cast %3 : vector<32xf32> to vector<1x32xf32>
    %25 = vector.broadcast %24 : vector<1x32xf32> to vector<16x32xf32>
    %26 = arith.mulf %23, %25 : vector<16x32xf32>
    %27 = vector.shape_cast %5 : vector<32xf32> to vector<1x32xf32>
    %28 = vector.broadcast %27 : vector<1x32xf32> to vector<16x32xf32>
    %29 = arith.addf %26, %28 : vector<16x32xf32>
    %c0_10 = arith.constant 0 : index
    %c0_11 = arith.constant 0 : index
    %30 = vector.load %arg4[%c0_10, %c0_11] : memref<32x96xf32, #tpu.memory_space<vmem>>, vector<32x96xf32>
    %cst_12 = arith.constant dense<0.000000e+00> : vector<16x96xf32>
    %31 = tpu.matmul %29, %30, %cst_12 {dimension_numbers = #tpu.dot_dimension_numbers<[1], [0], [0], [1], [0, 0, 1, 1], [], []>} : vector<16x32xf32>, vector<32x96xf32>, vector<16x96xf32> -> vector<16x96xf32>
    %c0_13 = arith.constant 0 : index
    %c0_14 = arith.constant 0 : index
    %32 = vector.load %arg5[%c0_13, %c0_14] : memref<1x96xf32, #tpu.memory_space<vmem>>, vector<1x96xf32>
    %33 = vector.shape_cast %32 : vector<1x96xf32> to vector<96xf32>
    %34 = vector.shape_cast %33 : vector<96xf32> to vector<1x96xf32>
    %35 = vector.broadcast %34 : vector<1x96xf32> to vector<16x96xf32>
    %36 = arith.addf %31, %35 : vector<16x96xf32>
    %37 = vector.extract_strided_slice %36 {offsets = [0, 0], sizes = [16, 32], strides = [1, 1]} : vector<16x96xf32> to vector<16x32xf32>
    %38 = vector.shape_cast %37 : vector<16x32xf32> to vector<2x8x32xf32>
    %39 = vector.extract_strided_slice %36 {offsets = [0, 32], sizes = [16, 32], strides = [1, 1]} : vector<16x96xf32> to vector<16x32xf32>
    %40 = vector.shape_cast %39 : vector<16x32xf32> to vector<2x8x32xf32>
    %41 = vector.extract_strided_slice %36 {offsets = [0, 64], sizes = [16, 32], strides = [1, 1]} : vector<16x96xf32> to vector<16x32xf32>
    %42 = vector.shape_cast %41 : vector<16x32xf32> to vector<2x8x32xf32>
    %43 = vector.extract_strided_slice %38 {offsets = [0, 0, 0], sizes = [2, 8, 8], strides = [1, 1, 1]} : vector<2x8x32xf32> to vector<2x8x8xf32>
    %44 = vector.extract_strided_slice %40 {offsets = [0, 0, 0], sizes = [2, 8, 8], strides = [1, 1, 1]} : vector<2x8x32xf32> to vector<2x8x8xf32>
    %cst_15 = arith.constant dense<0.000000e+00> : vector<2x8x8xf32>
    %45 = tpu.matmul %43, %44, %cst_15 {dimension_numbers = #tpu.dot_dimension_numbers<[2], [2], [1], [1], [0, 0, 0, 1, 1, 1], [0], [0]>} : vector<2x8x8xf32>, vector<2x8x8xf32>, vector<2x8x8xf32> -> vector<2x8x8xf32>
    %cst_16 = arith.constant dense<0xFF800000> : vector<2x8xf32>
    %46 = vector.multi_reduction <maximumf>, %45, %cst_16 [2] : vector<2x8x8xf32> to vector<2x8xf32>
    %47 = vector.shape_cast %46 : vector<2x8xf32> to vector<2x8x1xf32>
    %48 = vector.broadcast %47 : vector<2x8x1xf32> to vector<2x8x8xf32>
    %49 = arith.subf %45, %48 : vector<2x8x8xf32>
    %50 = math.exp %49 : vector<2x8x8xf32>
    %cst_17 = arith.constant dense<0.000000e+00> : vector<2x8xf32>
    %51 = vector.multi_reduction <add>, %50, %cst_17 [2] : vector<2x8x8xf32> to vector<2x8xf32>
    %52 = vector.shape_cast %51 : vector<2x8xf32> to vector<2x8x1xf32>
    %53 = tpu.reciprocal %52 : vector<2x8x1xf32> -> vector<2x8x1xf32>
    %54 = vector.broadcast %53 : vector<2x8x1xf32> to vector<2x8x8xf32>
    %55 = arith.mulf %50, %54 : vector<2x8x8xf32>
    %56 = vector.extract_strided_slice %42 {offsets = [0, 0, 0], sizes = [2, 8, 8], strides = [1, 1, 1]} : vector<2x8x32xf32> to vector<2x8x8xf32>
    %cst_18 = arith.constant dense<0.000000e+00> : vector<2x8x8xf32>
    %57 = tpu.matmul %55, %56, %cst_18 {dimension_numbers = #tpu.dot_dimension_numbers<[2], [1], [1], [2], [0, 0, 0, 1, 1, 2], [0], [0]>} : vector<2x8x8xf32>, vector<2x8x8xf32>, vector<2x8x8xf32> -> vector<2x8x8xf32>
    %c0_19 = arith.constant 0 : index
    %c0_20 = arith.constant 0 : index
    %c0_21 = arith.constant 0 : index
    %58 = vector.load %arg15[%c0_19, %c0_20, %c0_21] : memref<2x8x32xf32, #tpu.memory_space<vmem>>, vector<2x8x8xf32>
    tpu.vector_store %arg15[%c0_19, %c0_20, %c0_21], %57 {strides = array<i32>} : memref<2x8x32xf32, #tpu.memory_space<vmem>>, vector<2x8x8xf32>,
    %59 = vector.extract_strided_slice %38 {offsets = [0, 0, 8], sizes = [2, 8, 8], strides = [1, 1, 1]} : vector<2x8x32xf32> to vector<2x8x8xf32>
    %60 = vector.extract_strided_slice %40 {offsets = [0, 0, 8], sizes = [2, 8, 8], strides = [1, 1, 1]} : vector<2x8x32xf32> to vector<2x8x8xf32>
    %cst_22 = arith.constant dense<0.000000e+00> : vector<2x8x8xf32>
    %61 = tpu.matmul %59, %60, %cst_22 {dimension_numbers = #tpu.dot_dimension_numbers<[2], [2], [1], [1], [0, 0, 0, 1, 1, 1], [0], [0]>} : vector<2x8x8xf32>, vector<2x8x8xf32>, vector<2x8x8xf32> -> vector<2x8x8xf32>
    %cst_23 = arith.constant dense<0xFF800000> : vector<2x8xf32>
    %62 = vector.multi_reduction <maximumf>, %61, %cst_23 [2] : vector<2x8x8xf32> to vector<2x8xf32>
    %63 = vector.shape_cast %62 : vector<2x8xf32> to vector<2x8x1xf32>
    %64 = vector.broadcast %63 : vector<2x8x1xf32> to vector<2x8x8xf32>
    %65 = arith.subf %61, %64 : vector<2x8x8xf32>
    %66 = math.exp %65 : vector<2x8x8xf32>
    %cst_24 = arith.constant dense<0.000000e+00> : vector<2x8xf32>
    %67 = vector.multi_reduction <add>, %66, %cst_24 [2] : vector<2x8x8xf32> to vector<2x8xf32>
    %68 = vector.shape_cast %67 : vector<2x8xf32> to vector<2x8x1xf32>
    %69 = tpu.reciprocal %68 : vector<2x8x1xf32> -> vector<2x8x1xf32>
    %70 = vector.broadcast %69 : vector<2x8x1xf32> to vector<2x8x8xf32>
    %71 = arith.mulf %66, %70 : vector<2x8x8xf32>
    %72 = vector.extract_strided_slice %42 {offsets = [0, 0, 8], sizes = [2, 8, 8], strides = [1, 1, 1]} : vector<2x8x32xf32> to vector<2x8x8xf32>
    %cst_25 = arith.constant dense<0.000000e+00> : vector<2x8x8xf32>
    %73 = tpu.matmul %71, %72, %cst_25 {dimension_numbers = #tpu.dot_dimension_numbers<[2], [1], [1], [2], [0, 0, 0, 1, 1, 2], [0], [0]>} : vector<2x8x8xf32>, vector<2x8x8xf32>, vector<2x8x8xf32> -> vector<2x8x8xf32>
    %c0_26 = arith.constant 0 : index
    %c0_27 = arith.constant 0 : index
    %c8 = arith.constant 8 : index
    %74 = vector.load %arg15[%c0_26, %c0_27, %c8] : memref<2x8x32xf32, #tpu.memory_space<vmem>>, vector<2x8x8xf32>
    tpu.vector_store %arg15[%c0_26, %c0_27, %c8], %73 {strides = array<i32>} : memref<2x8x32xf32, #tpu.memory_space<vmem>>, vector<2x8x8xf32>,
    %75 = vector.extract_strided_slice %38 {offsets = [0, 0, 16], sizes = [2, 8, 8], strides = [1, 1, 1]} : vector<2x8x32xf32> to vector<2x8x8xf32>
    %76 = vector.extract_strided_slice %40 {offsets = [0, 0, 16], sizes = [2, 8, 8], strides = [1, 1, 1]} : vector<2x8x32xf32> to vector<2x8x8xf32>
    %cst_28 = arith.constant dense<0.000000e+00> : vector<2x8x8xf32>
    %77 = tpu.matmul %75, %76, %cst_28 {dimension_numbers = #tpu.dot_dimension_numbers<[2], [2], [1], [1], [0, 0, 0, 1, 1, 1], [0], [0]>} : vector<2x8x8xf32>, vector<2x8x8xf32>, vector<2x8x8xf32> -> vector<2x8x8xf32>
    %cst_29 = arith.constant dense<0xFF800000> : vector<2x8xf32>
    %78 = vector.multi_reduction <maximumf>, %77, %cst_29 [2] : vector<2x8x8xf32> to vector<2x8xf32>
    %79 = vector.shape_cast %78 : vector<2x8xf32> to vector<2x8x1xf32>
    %80 = vector.broadcast %79 : vector<2x8x1xf32> to vector<2x8x8xf32>
    %81 = arith.subf %77, %80 : vector<2x8x8xf32>
    %82 = math.exp %81 : vector<2x8x8xf32>
    %cst_30 = arith.constant dense<0.000000e+00> : vector<2x8xf32>
    %83 = vector.multi_reduction <add>, %82, %cst_30 [2] : vector<2x8x8xf32> to vector<2x8xf32>
    %84 = vector.shape_cast %83 : vector<2x8xf32> to vector<2x8x1xf32>
    %85 = tpu.reciprocal %84 : vector<2x8x1xf32> -> vector<2x8x1xf32>
    %86 = vector.broadcast %85 : vector<2x8x1xf32> to vector<2x8x8xf32>
    %87 = arith.mulf %82, %86 : vector<2x8x8xf32>
    %88 = vector.extract_strided_slice %42 {offsets = [0, 0, 16], sizes = [2, 8, 8], strides = [1, 1, 1]} : vector<2x8x32xf32> to vector<2x8x8xf32>
    %cst_31 = arith.constant dense<0.000000e+00> : vector<2x8x8xf32>
    %89 = tpu.matmul %87, %88, %cst_31 {dimension_numbers = #tpu.dot_dimension_numbers<[2], [1], [1], [2], [0, 0, 0, 1, 1, 2], [0], [0]>} : vector<2x8x8xf32>, vector<2x8x8xf32>, vector<2x8x8xf32> -> vector<2x8x8xf32>
    %c0_32 = arith.constant 0 : index
    %c0_33 = arith.constant 0 : index
    %c16 = arith.constant 16 : index
    %90 = vector.load %arg15[%c0_32, %c0_33, %c16] : memref<2x8x32xf32, #tpu.memory_space<vmem>>, vector<2x8x8xf32>
    tpu.vector_store %arg15[%c0_32, %c0_33, %c16], %89 {strides = array<i32>} : memref<2x8x32xf32, #tpu.memory_space<vmem>>, vector<2x8x8xf32>,
    %91 = vector.extract_strided_slice %38 {offsets = [0, 0, 24], sizes = [2, 8, 8], strides = [1, 1, 1]} : vector<2x8x32xf32> to vector<2x8x8xf32>
    %92 = vector.extract_strided_slice %40 {offsets = [0, 0, 24], sizes = [2, 8, 8], strides = [1, 1, 1]} : vector<2x8x32xf32> to vector<2x8x8xf32>
    %cst_34 = arith.constant dense<0.000000e+00> : vector<2x8x8xf32>
    %93 = tpu.matmul %91, %92, %cst_34 {dimension_numbers = #tpu.dot_dimension_numbers<[2], [2], [1], [1], [0, 0, 0, 1, 1, 1], [0], [0]>} : vector<2x8x8xf32>, vector<2x8x8xf32>, vector<2x8x8xf32> -> vector<2x8x8xf32>
    %cst_35 = arith.constant dense<0xFF800000> : vector<2x8xf32>
    %94 = vector.multi_reduction <maximumf>, %93, %cst_35 [2] : vector<2x8x8xf32> to vector<2x8xf32>
    %95 = vector.shape_cast %94 : vector<2x8xf32> to vector<2x8x1xf32>
    %96 = vector.broadcast %95 : vector<2x8x1xf32> to vector<2x8x8xf32>
    %97 = arith.subf %93, %96 : vector<2x8x8xf32>
    %98 = math.exp %97 : vector<2x8x8xf32>
    %cst_36 = arith.constant dense<0.000000e+00> : vector<2x8xf32>
    %99 = vector.multi_reduction <add>, %98, %cst_36 [2] : vector<2x8x8xf32> to vector<2x8xf32>
    %100 = vector.shape_cast %99 : vector<2x8xf32> to vector<2x8x1xf32>
    %101 = tpu.reciprocal %100 : vector<2x8x1xf32> -> vector<2x8x1xf32>
    %102 = vector.broadcast %101 : vector<2x8x1xf32> to vector<2x8x8xf32>
    %103 = arith.mulf %98, %102 : vector<2x8x8xf32>
    %104 = vector.extract_strided_slice %42 {offsets = [0, 0, 24], sizes = [2, 8, 8], strides = [1, 1, 1]} : vector<2x8x32xf32> to vector<2x8x8xf32>
    %cst_37 = arith.constant dense<0.000000e+00> : vector<2x8x8xf32>
    %105 = tpu.matmul %103, %104, %cst_37 {dimension_numbers = #tpu.dot_dimension_numbers<[2], [1], [1], [2], [0, 0, 0, 1, 1, 2], [0], [0]>} : vector<2x8x8xf32>, vector<2x8x8xf32>, vector<2x8x8xf32> -> vector<2x8x8xf32>
    %c0_38 = arith.constant 0 : index
    %c0_39 = arith.constant 0 : index
    %c24 = arith.constant 24 : index
    %106 = vector.load %arg15[%c0_38, %c0_39, %c24] : memref<2x8x32xf32, #tpu.memory_space<vmem>>, vector<2x8x8xf32>
    tpu.vector_store %arg15[%c0_38, %c0_39, %c24], %105 {strides = array<i32>} : memref<2x8x32xf32, #tpu.memory_space<vmem>>, vector<2x8x8xf32>,
    %c0_40 = arith.constant 0 : index
    %c0_41 = arith.constant 0 : index
    %c0_42 = arith.constant 0 : index
    %107 = vector.load %arg15[%c0_40, %c0_41, %c0_42] : memref<2x8x32xf32, #tpu.memory_space<vmem>>, vector<2x8x32xf32>
    %108 = vector.shape_cast %107 : vector<2x8x32xf32> to vector<16x32xf32>
    %c0_43 = arith.constant 0 : index
    %c0_44 = arith.constant 0 : index
    %109 = vector.load %arg6[%c0_43, %c0_44] : memref<32x32xf32, #tpu.memory_space<vmem>>, vector<32x32xf32>
    %cst_45 = arith.constant dense<0.000000e+00> : vector<16x32xf32>
    %110 = tpu.matmul %108, %109, %cst_45 {dimension_numbers = #tpu.dot_dimension_numbers<[1], [0], [0], [1], [0, 0, 1, 1], [], []>} : vector<16x32xf32>, vector<32x32xf32>, vector<16x32xf32> -> vector<16x32xf32>
    %c0_46 = arith.constant 0 : index
    %c0_47 = arith.constant 0 : index
    %111 = vector.load %arg7[%c0_46, %c0_47] : memref<1x32xf32, #tpu.memory_space<vmem>>, vector<1x32xf32>
    %112 = vector.shape_cast %111 : vector<1x32xf32> to vector<32xf32>
    %113 = vector.shape_cast %112 : vector<32xf32> to vector<1x32xf32>
    %114 = vector.broadcast %113 : vector<1x32xf32> to vector<16x32xf32>
    %115 = arith.addf %110, %114 : vector<16x32xf32>
    %116 = arith.addf %115, %1 : vector<16x32xf32>
    %c0_48 = arith.constant 0 : index
    %c0_49 = arith.constant 0 : index
    %117 = vector.load %arg8[%c0_48, %c0_49] : memref<1x32xf32, #tpu.memory_space<vmem>>, vector<1x32xf32>
    %118 = vector.shape_cast %117 : vector<1x32xf32> to vector<32xf32>
    %c0_50 = arith.constant 0 : index
    %c0_51 = arith.constant 0 : index
    %119 = vector.load %arg9[%c0_50, %c0_51] : memref<1x32xf32, #tpu.memory_space<vmem>>, vector<1x32xf32>
    %120 = vector.shape_cast %119 : vector<1x32xf32> to vector<32xf32>
    %cst_52 = arith.constant dense<0.000000e+00> : vector<16xf32>
    %121 = vector.multi_reduction <add>, %116, %cst_52 [1] : vector<16x32xf32> to vector<16xf32>
    %122 = vector.shape_cast %121 : vector<16xf32> to vector<16x1xf32>
    %cst_53 = arith.constant 3.200000e+01 : f32
    %123 = vector.broadcast %cst_53 : f32 to vector<16x1xf32>
    %124 = arith.divf %122, %123 : vector<16x1xf32>
    %125 = vector.broadcast %124 : vector<16x1xf32> to vector<16x32xf32>
    %126 = arith.subf %116, %125 : vector<16x32xf32>
    %127 = arith.mulf %126, %126 : vector<16x32xf32>
    %cst_54 = arith.constant dense<0.000000e+00> : vector<16xf32>
    %128 = vector.multi_reduction <add>, %127, %cst_54 [1] : vector<16x32xf32> to vector<16xf32>
    %129 = vector.shape_cast %128 : vector<16xf32> to vector<16x1xf32>
    %cst_55 = arith.constant 3.200000e+01 : f32
    %130 = vector.broadcast %cst_55 : f32 to vector<16x1xf32>
    %131 = arith.divf %129, %130 : vector<16x1xf32>
    %132 = vector.broadcast %124 : vector<16x1xf32> to vector<16x32xf32>
    %133 = arith.subf %116, %132 : vector<16x32xf32>
    %cst_56 = arith.constant 9.99999997E-7 : f32
    %134 = vector.broadcast %cst_56 : f32 to vector<16x1xf32>
    %135 = arith.addf %131, %134 : vector<16x1xf32>
    %136 = math.rsqrt %135 : vector<16x1xf32>
    %137 = vector.broadcast %136 : vector<16x1xf32> to vector<16x32xf32>
    %138 = arith.mulf %133, %137 : vector<16x32xf32>
    %139 = vector.shape_cast %118 : vector<32xf32> to vector<1x32xf32>
    %140 = vector.broadcast %139 : vector<1x32xf32> to vector<16x32xf32>
    %141 = arith.mulf %138, %140 : vector<16x32xf32>
    %142 = vector.shape_cast %120 : vector<32xf32> to vector<1x32xf32>
    %143 = vector.broadcast %142 : vector<1x32xf32> to vector<16x32xf32>
    %144 = arith.addf %141, %143 : vector<16x32xf32>
    %c0_57 = arith.constant 0 : index
    %c0_58 = arith.constant 0 : index
    %145 = vector.load %arg10[%c0_57, %c0_58] : memref<32x64xf32, #tpu.memory_space<vmem>>, vector<32x64xf32>
    %cst_59 = arith.constant dense<0.000000e+00> : vector<16x64xf32>
    %146 = tpu.matmul %144, %145, %cst_59 {dimension_numbers = #tpu.dot_dimension_numbers<[1], [0], [0], [1], [0, 0, 1, 1], [], []>} : vector<16x32xf32>, vector<32x64xf32>, vector<16x64xf32> -> vector<16x64xf32>
    %c0_60 = arith.constant 0 : index
    %c0_61 = arith.constant 0 : index
    %147 = vector.load %arg11[%c0_60, %c0_61] : memref<1x64xf32, #tpu.memory_space<vmem>>, vector<1x64xf32>
    %148 = vector.shape_cast %147 : vector<1x64xf32> to vector<64xf32>
    %149 = vector.shape_cast %148 : vector<64xf32> to vector<1x64xf32>
    %150 = vector.broadcast %149 : vector<1x64xf32> to vector<16x64xf32>
    %151 = arith.addf %146, %150 : vector<16x64xf32>
    %cst_62 = arith.constant 5.000000e-01 : f32
    %152 = vector.broadcast %cst_62 : f32 to vector<16x64xf32>
    %153 = arith.mulf %152, %151 : vector<16x64xf32>
    %cst_63 = arith.constant 0.707106769 : f32
    %154 = vector.broadcast %cst_63 : f32 to vector<16x64xf32>
    %155 = arith.mulf %151, %154 : vector<16x64xf32>
    %156 = math.erf %155 : vector<16x64xf32>
    %cst_64 = arith.constant 1.000000e+00 : f32
    %157 = vector.broadcast %cst_64 : f32 to vector<16x64xf32>
    %158 = arith.addf %157, %156 : vector<16x64xf32>
    %159 = arith.mulf %153, %158 : vector<16x64xf32>
    %c0_65 = arith.constant 0 : index
    %c0_66 = arith.constant 0 : index
    %160 = vector.load %arg12[%c0_65, %c0_66] : memref<64x32xf32, #tpu.memory_space<vmem>>, vector<64x32xf32>
    %cst_67 = arith.constant dense<0.000000e+00> : vector<16x32xf32>
    %161 = tpu.matmul %159, %160, %cst_67 {dimension_numbers = #tpu.dot_dimension_numbers<[1], [0], [0], [1], [0, 0, 1, 1], [], []>} : vector<16x64xf32>, vector<64x32xf32>, vector<16x32xf32> -> vector<16x32xf32>
    %c0_68 = arith.constant 0 : index
    %c0_69 = arith.constant 0 : index
    %162 = vector.load %arg13[%c0_68, %c0_69] : memref<1x32xf32, #tpu.memory_space<vmem>>, vector<1x32xf32>
    %163 = vector.shape_cast %162 : vector<1x32xf32> to vector<32xf32>
    %164 = vector.shape_cast %163 : vector<32xf32> to vector<1x32xf32>
    %165 = vector.broadcast %164 : vector<1x32xf32> to vector<16x32xf32>
    %166 = arith.addf %161, %165 : vector<16x32xf32>
    %167 = arith.addf %116, %166 : vector<16x32xf32>
    %168 = vector.shape_cast %167 : vector<16x32xf32> to vector<2x8x32xf32>
    %c0_70 = arith.constant 0 : index
    %c0_71 = arith.constant 0 : index
    %c0_72 = arith.constant 0 : index
    %169 = vector.load %arg14[%c0_70, %c0_71, %c0_72] : memref<2x8x32xf32, #tpu.memory_space<vmem>>, vector<2x8x32xf32>
    tpu.vector_store %arg14[%c0_70, %c0_71, %c0_72], %168 {strides = array<i32>} : memref<2x8x32xf32, #tpu.memory_space<vmem>>, vector<2x8x32xf32>,
    return
  }
  func.func @transform_0(%arg0: i32) -> (i32, i32, i32) {
    %c0_i32 = arith.constant 0 : i32
    %c0_i32_0 = arith.constant 0 : i32
    %c0_i32_1 = arith.constant 0 : i32
    return %arg0, %c0_i32, %c0_i32_0 : i32, i32, i32
  }
  func.func @transform_1(%arg0: i32) -> (i32, i32) {
    %c0_i32 = arith.constant 0 : i32
    %c0_i32_0 = arith.constant 0 : i32
    %c0_i32_1 = arith.constant 0 : i32
    return %c0_i32, %c0_i32_0 : i32, i32
  }
  func.func @transform_2(%arg0: i32) -> (i32, i32) {
    %c0_i32 = arith.constant 0 : i32
    %c0_i32_0 = arith.constant 0 : i32
    %c0_i32_1 = arith.constant 0 : i32
    return %c0_i32, %c0_i32_0 : i32, i32
  }
  func.func @transform_3(%arg0: i32) -> (i32, i32) {
    %c0_i32 = arith.constant 0 : i32
    %c0_i32_0 = arith.constant 0 : i32
    %c0_i32_1 = arith.constant 0 : i32
    return %c0_i32, %c0_i32_0 : i32, i32
  }
  func.func @transform_4(%arg0: i32) -> (i32, i32) {
    %c0_i32 = arith.constant 0 : i32
    %c0_i32_0 = arith.constant 0 : i32
    %c0_i32_1 = arith.constant 0 : i32
    return %c0_i32, %c0_i32_0 : i32, i32
  }
  func.func @transform_5(%arg0: i32) -> (i32, i32) {
    %c0_i32 = arith.constant 0 : i32
    %c0_i32_0 = arith.constant 0 : i32
    %c0_i32_1 = arith.constant 0 : i32
    return %c0_i32, %c0_i32_0 : i32, i32
  }
  func.func @transform_6(%arg0: i32) -> (i32, i32) {
    %c0_i32 = arith.constant 0 : i32
    %c0_i32_0 = arith.constant 0 : i32
    %c0_i32_1 = arith.constant 0 : i32
    return %c0_i32, %c0_i32_0 : i32, i32
  }
  func.func @transform_7(%arg0: i32) -> (i32, i32) {
    %c0_i32 = arith.constant 0 : i32
    %c0_i32_0 = arith.constant 0 : i32
    %c0_i32_1 = arith.constant 0 : i32
    return %c0_i32, %c0_i32_0 : i32, i32
  }
  func.func @transform_8(%arg0: i32) -> (i32, i32) {
    %c0_i32 = arith.constant 0 : i32
    %c0_i32_0 = arith.constant 0 : i32
    %c0_i32_1 = arith.constant 0 : i32
    return %c0_i32, %c0_i32_0 : i32, i32
  }
  func.func @transform_9(%arg0: i32) -> (i32, i32) {
    %c0_i32 = arith.constant 0 : i32
    %c0_i32_0 = arith.constant 0 : i32
    %c0_i32_1 = arith.constant 0 : i32
    return %c0_i32, %c0_i32_0 : i32, i32
  }
  func.func @transform_10(%arg0: i32) -> (i32, i32) {
    %c0_i32 = arith.constant 0 : i32
    %c0_i32_0 = arith.constant 0 : i32
    %c0_i32_1 = arith.constant 0 : i32
    return %c0_i32, %c0_i32_0 : i32, i32
  }
  func.func @transform_11(%arg0: i32) -> (i32, i32) {
    %c0_i32 = arith.constant 0 : i32
    %c0_i32_0 = arith.constant 0 : i32
    %c0_i32_1 = arith.constant 0 : i32
    return %c0_i32, %c0_i32_0 : i32, i32
  }
  func.func @transform_12(%arg0: i32) -> (i32, i32) {
    %c0_i32 = arith.constant 0 : i32
    %c0_i32_0 = arith.constant 0 : i32
    %c0_i32_1 = arith.constant 0 : i32
    return %c0_i32, %c0_i32_0 : i32, i32
  }
  func.func @transform_13(%arg0: i32) -> (i32, i32, i32) {
    %c0_i32 = arith.constant 0 : i32
    %c0_i32_0 = arith.constant 0 : i32
    %c0_i32_1 = arith.constant 0 : i32
    return %arg0, %c0_i32, %c0_i32_0 : i32, i32, i32
  }
}

</mosaic_0001>

<bundles_post_ra>
// kernel: tpu_custom_call.1
= control target key start
LH: loop header
LB: loop body
LE: loop exit
PB: predicated region body
PF: predicated region fallthrough
CT: control target
= control target key end

     0   :  { %18 = vsyncpa [#allocation4], 0  ;;  %s3187_s0 = inlined_call_operand.hbm [shape: f32[2,8,32], index: 0, kind: input, shape index: {}]   ;;  %s3188_s1 = inlined_call_operand.hbm [shape: f32[1,32], index: 1, kind: input, shape index: {}]   ;;  %s3189_s2 = inlined_call_operand.hbm [shape: f32[1,32], index: 2, kind: input, shape index: {}]   ;;  %s3190_s3 = inlined_call_operand.hbm [shape: f32[32,96], index: 3, kind: input, shape index: {}]   ;;  %s3191_s4 = inlined_call_operand.hbm [shape: f32[1,96], index: 4, kind: input, shape index: {}]   ;;  %s3192_s5 = inlined_call_operand.hbm [shape: f32[32,32], index: 5, kind: input, shape index: {}]   ;;  %s3193_s6 = inlined_call_operand.hbm [shape: f32[1,32], index: 6, kind: input, shape index: {}]   ;;  %s3194_s7 = inlined_call_operand.hbm [shape: f32[1,32], index: 7, kind: input, shape index: {}]   ;;  %s3195_s8 = inlined_call_operand.hbm [shape: f32[1,32], index: 8, kind: input, shape index: {}]   ;;  %s3196_s9 = inlined_call_operand.hbm [shape: f32[32,64], index: 9, kind: input, shape index: {}]   ;;  %s3197_s10 = inlined_call_operand.hbm [shape: f32[1,64], index: 10, kind: input, shape index: {}]   ;;  %s3198_s11 = inlined_call_operand.hbm [shape: f32[64,32], index: 11, kind: input, shape index: {}]   ;;  %s3199_s12 = inlined_call_operand.hbm [shape: f32[1,32], index: 12, kind: input, shape index: {}]   ;;  %s3200_s13 = inlined_call_operand.hbm [shape: f32[2,8,32], index: 13, kind: output, shape index: {}]  }
   0x1   :  { %19 = vsyncpa [#allocation7], 0 }
   0x2   :  { %20 = vsyncpa [#allocation10], 0 }
   0x3   :  { %21 = vsyncpa [#allocation13], 0 }
   0x4   :  { %22 = vsyncpa [#allocation16], 0 }
   0x5   :  { %23 = vsyncpa [#allocation19], 0 }
   0x6   :  { %24 = vsyncpa [#allocation22], 0 }
   0x7   :  { %25 = vsyncpa [#allocation5], 0  ;;  %s2736_s25 = smov [#allocation6]   ;;  %s2412_s29 = scalar_lea.hbm %s3188_s1, 16 }
   0x8   :  { %s44_s26 = sshll.u32 %s2736_s25, 4  ;;  %p2413_p0 = scmp.ne.s32.totalorder %s3188_s1, %s2412_s29  ;;  %s45_s26 = int_to_ptr.vmem [resolvable:$true] %s44_s26 }
   0x9   :  { %p2416_p1 = scmp.lt.u32.totalorder %s2412_s29, %s3188_s1 }
   0xb   :  { %p2418_p2 = pnand %p2416_p1, %p2413_p0 }
   0xd   :  { %2421 = shalt.err (!%p2418_p2)
}
   0xe   :  { %s2422_s17 = scalar_lea.vmem %s45_s26, 16  ;;  %s2426_s18 = scalar_lea.vmem %s45_s26, 32 }
   0xf   :  { %p2423_p3 = scmp.ne.s32.totalorder %s45_s26, %s2422_s17  ;;  %p2427_p4 = scmp.lt.s32.totalorder %s45_s26, %s45_s26 }
  0x10   :  { %p2428_p5 = scmp.lt.s32.totalorder %s2426_s18, %s2422_s17 }
  0x12   :  { %p2429_p6 = por %p2428_p5, %p2427_p4 }
  0x14   :  { %p2430_p7 = pnand %p2429_p6, %p2423_p3 }
  0x16   :  { %2433 = shalt.err (!%p2430_p7)
}
  0x17   :  { %47 = dma.hbm_to_vmem [thread:$0]  %s3188_s1, 16, %s45_s26, [#allocation7]  }
  0x18   :  { %s2737_s21 = smov [#allocation9]   ;;  %s2738_s23 = smov [#allocation12]  }
  0x19   :  { %s63_s22 = sshll.u32 %s2737_s21, 4  ;;  %s85_s24 = sshll.u32 %s2738_s23, 4  ;;  %s64_s22 = int_to_ptr.vmem [resolvable:$true] %s63_s22  ;;  %s86_s24 = int_to_ptr.vmem [resolvable:$true] %s85_s24 }
  0x1a   :  { %s2434_s28 = scalar_lea.hbm %s3190_s3, 512 }
  0x1b   :  { %p2435_p8 = scmp.ne.s32.totalorder %s3190_s3, %s2434_s28  ;;  %p2438_p9 = scmp.lt.u32.totalorder %s2434_s28, %s3190_s3 }
  0x1d   :  { %p2440_p10 = pnand %p2438_p9, %p2435_p8 }
  0x1f   :  { %2443 = shalt.err (!%p2440_p10)
}
  0x20   :  { %s2444_s1 = scalar_lea.vmem %s64_s22, 512  ;;  %p2449_p12 = scmp.lt.s32.totalorder %s64_s22, %s64_s22 }
  0x21   :  { %p2445_p11 = scmp.ne.s32.totalorder %s64_s22, %s2444_s1  ;;  %p2450_p13 = scmp.lt.s32.totalorder %s2444_s1, %s2444_s1 }
  0x23   :  { %p2451_p0 = por %p2450_p13, %p2449_p12 }
  0x25   :  { %p2452_p1 = pnand %p2451_p0, %p2445_p11 }
  0x27   :  { %2455 = shalt.err (!%p2452_p1)
}
  0x28   :  { %s2739_s26 = smov 128   ;;  %s2740_s16 = smov 8  }
  0x29   :  { %69 = dma.hbm_to_vmem [thread:$0]  %s3190_s3, 512, %s64_s22, [#allocation10], %s2739_s26, %s2739_s26, %s2740_s16  }
  0x2a   :  { %s2456_s21 = scalar_lea.hbm %s3192_s5, 512 }
  0x2b   :  { %p2457_p2 = scmp.ne.s32.totalorder %s3192_s5, %s2456_s21  ;;  %p2460_p3 = scmp.lt.u32.totalorder %s2456_s21, %s3192_s5 }
  0x2d   :  { %p2462_p4 = pnand %p2460_p3, %p2457_p2 }
  0x2f   :  { %2465 = shalt.err (!%p2462_p4)
}
  0x30   :  { %s2466_s29 = scalar_lea.vmem %s86_s24, 512  ;;  %p2471_p6 = scmp.lt.s32.totalorder %s86_s24, %s86_s24 }
  0x31   :  { %p2467_p5 = scmp.ne.s32.totalorder %s86_s24, %s2466_s29  ;;  %p2472_p7 = scmp.lt.s32.totalorder %s2466_s29, %s2466_s29 }
  0x33   :  { %p2473_p8 = por %p2472_p7, %p2471_p6 }
  0x35   :  { %p2474_p9 = pnand %p2473_p8, %p2467_p5 }
  0x37   :  { %2477 = shalt.err (!%p2474_p9)
}
  0x38   :  { %91 = dma.hbm_to_vmem [thread:$0]  %s3192_s5, 512, %s86_s24, [#allocation13], %s2739_s26, %s2739_s26, %s2740_s16  }
  0x39   :  { %s2741_s30 = smov [#allocation15]   ;;  %s2742_s15 = smov [#allocation18]  }
  0x3a   :  { %s108_s14 = sshll.u32 %s2741_s30, 4  ;;  %s127_s1 = sshll.u32 %s2742_s15, 4  ;;  %s109_s14 = int_to_ptr.vmem [resolvable:$true] %s108_s14  ;;  %s128_s1 = int_to_ptr.vmem [resolvable:$true] %s127_s1 }
  0x3b   :  { %s2478_s19 = scalar_lea.hbm %s3194_s7, 16 }
  0x3c   :  { %p2479_p10 = scmp.ne.s32.totalorder %s3194_s7, %s2478_s19  ;;  %p2482_p11 = scmp.lt.u32.totalorder %s2478_s19, %s3194_s7 }
  0x3e   :  { %p2484_p12 = pnand %p2482_p11, %p2479_p10 }
  0x40   :  { %2487 = shalt.err (!%p2484_p12)
}
  0x41   :  { %s2488_s5 = scalar_lea.vmem %s109_s14, 16  ;;  %s2492_s24 = scalar_lea.vmem %s109_s14, 32 }
  0x42   :  { %p2489_p13 = scmp.ne.s32.totalorder %s109_s14, %s2488_s5  ;;  %p2493_p0 = scmp.lt.s32.totalorder %s109_s14, %s109_s14 }
  0x43   :  { %p2494_p1 = scmp.lt.s32.totalorder %s2492_s24, %s2488_s5 }
  0x45   :  { %p2495_p2 = por %p2494_p1, %p2493_p0 }
  0x47   :  { %p2496_p3 = pnand %p2495_p2, %p2489_p13 }
  0x49   :  { %2499 = shalt.err (!%p2496_p3)
}
  0x4a   :  { %111 = dma.hbm_to_vmem [thread:$0]  %s3194_s7, 16, %s109_s14, [#allocation16]  }
  0x4b   :  { %s2500_s22 = scalar_lea.hbm %s3196_s9, 512 }
  0x4c   :  { %p2501_p4 = scmp.ne.s32.totalorder %s3196_s9, %s2500_s22  ;;  %p2504_p5 = scmp.lt.u32.totalorder %s2500_s22, %s3196_s9 }
  0x4e   :  { %p2506_p6 = pnand %p2504_p5, %p2501_p4 }
  0x50   :  { %2509 = shalt.err (!%p2506_p6)
}
  0x51   :  { %s2510_s19 = scalar_lea.vmem %s128_s1, 512  ;;  %p2515_p8 = scmp.lt.s32.totalorder %s128_s1, %s128_s1 }
  0x52   :  { %p2511_p7 = scmp.ne.s32.totalorder %s128_s1, %s2510_s19  ;;  %p2516_p9 = scmp.lt.s32.totalorder %s2510_s19, %s2510_s19 }
  0x54   :  { %p2517_p10 = por %p2516_p9, %p2515_p8 }
  0x56   :  { %p2518_p11 = pnand %p2517_p10, %p2511_p7 }
  0x58   :  { %2521 = shalt.err (!%p2518_p11)
}
  0x59   :  { %133 = dma.hbm_to_vmem [thread:$0]  %s3196_s9, 512, %s128_s1, [#allocation19], %s2739_s26, %s2739_s26, %s2740_s16  }
  0x5a   :  { %s2743_s20 = smov [#allocation21]   ;;  %s2744_s23 = smov [#allocation3]  }
  0x5b   :  { %s149_s21 = sshll.u32 %s2743_s20, 4  ;;  %s31_s25 = sshll.u32 %s2744_s23, 4  ;;  %s150_s21 = int_to_ptr.vmem [resolvable:$true] %s149_s21  ;;  %s32_s25 = int_to_ptr.vmem [resolvable:$true] %s31_s25 }
  0x5c   :  { %s2522_s27 = scalar_lea.hbm %s3198_s11, 1024 }
  0x5d   :  { %p2523_p12 = scmp.ne.s32.totalorder %s3198_s11, %s2522_s27  ;;  %p2526_p13 = scmp.lt.u32.totalorder %s2522_s27, %s3198_s11 }
  0x5f   :  { %p2528_p0 = pnand %p2526_p13, %p2523_p12 }
  0x61   :  { %2531 = shalt.err (!%p2528_p0)
}
  0x62   :  { %s2532_s9 = scalar_lea.vmem %s150_s21, 1024  ;;  %p2537_p2 = scmp.lt.s32.totalorder %s150_s21, %s150_s21 }
  0x63   :  { %p2533_p1 = scmp.ne.s32.totalorder %s150_s21, %s2532_s9  ;;  %p2538_p3 = scmp.lt.s32.totalorder %s2532_s9, %s2532_s9 }
  0x65   :  { %p2539_p4 = por %p2538_p3, %p2537_p2 }
  0x67   :  { %p2540_p5 = pnand %p2539_p4, %p2533_p1 }
  0x69   :  { %2543 = shalt.err (!%p2540_p5)
}
  0x6a   :  { %155 = dma.hbm_to_vmem [thread:$0]  %s3198_s11, 1024, %s150_s21, [#allocation22], %s2739_s26, %s2739_s26, %s2740_s16  }
  0x6b   :  { %s2544_s18 = scalar_lea.hbm %s3187_s0, 256 }
  0x6c   :  { %p2545_p6 = scmp.ne.s32.totalorder %s3187_s0, %s2544_s18  ;;  %p2548_p7 = scmp.lt.u32.totalorder %s2544_s18, %s3187_s0 }
  0x6e   :  { %p2550_p8 = pnand %p2548_p7, %p2545_p6 }
  0x70   :  { %2553 = shalt.err (!%p2550_p8)
}
  0x71   :  { %s2554_s23 = scalar_lea.vmem %s32_s25, 256  ;;  %p2559_p10 = scmp.lt.s32.totalorder %s32_s25, %s32_s25 }
  0x72   :  { %p2555_p9 = scmp.ne.s32.totalorder %s32_s25, %s2554_s23  ;;  %p2560_p11 = scmp.lt.s32.totalorder %s2554_s23, %s2554_s23 }
  0x74   :  { %p2561_p12 = por %p2560_p11, %p2559_p10 }
  0x76   :  { %p2562_p13 = pnand %p2561_p12, %p2555_p9 }
  0x78   :  { %2565 = shalt.err (!%p2562_p13)
}
  0x79   :  { %37 = dma.hbm_to_vmem [thread:$0]  %s3187_s0, 256, %s32_s25, [#allocation4], %s2739_s26, %s2739_s26, %s2740_s16  }
  0x7a   :  { %s2745_s5 = smov [#allocation8]   ;;  %s2746_s27 = smov [#allocation11]  }
  0x7b   :  { %s54_s24 = sshll.u32 %s2745_s5, 4  ;;  %s76_s28 = sshll.u32 %s2746_s27, 4  ;;  %s55_s24 = int_to_ptr.vmem [resolvable:$true] %s54_s24  ;;  %s77_s28 = int_to_ptr.vmem [resolvable:$true] %s76_s28 }
  0x7c   :  { %s2566_s22 = scalar_lea.hbm %s3189_s2, 16 }
  0x7d   :  { %p2567_p0 = scmp.ne.s32.totalorder %s3189_s2, %s2566_s22  ;;  %p2570_p1 = scmp.lt.u32.totalorder %s2566_s22, %s3189_s2 }
  0x7f   :  { %p2572_p2 = pnand %p2570_p1, %p2567_p0 }
  0x81   :  { %2575 = shalt.err (!%p2572_p2)
}
  0x82   :  { %s2576_s0 = scalar_lea.vmem %s55_s24, 16  ;;  %s2580_s25 = scalar_lea.vmem %s55_s24, 32 }
  0x83   :  { %p2577_p3 = scmp.ne.s32.totalorder %s55_s24, %s2576_s0  ;;  %p2581_p4 = scmp.lt.s32.totalorder %s55_s24, %s55_s24 }
  0x84   :  { %p2582_p5 = scmp.lt.s32.totalorder %s2580_s25, %s2576_s0 }
  0x86   :  { %p2583_p6 = por %p2582_p5, %p2581_p4 }
  0x88   :  { %p2584_p7 = pnand %p2583_p6, %p2577_p3 }
  0x8a   :  { %2587 = shalt.err (!%p2584_p7)
}
  0x8b   :  { %57 = dma.hbm_to_vmem [thread:$0]  %s3189_s2, 16, %s55_s24, [#allocation7]  }
  0x8c   :  { %s2588_s14 = scalar_lea.hbm %s3191_s4, 16 }
  0x8d   :  { %p2589_p8 = scmp.ne.s32.totalorder %s3191_s4, %s2588_s14  ;;  %p2592_p9 = scmp.lt.u32.totalorder %s2588_s14, %s3191_s4 }
  0x8f   :  { %p2594_p10 = pnand %p2592_p9, %p2589_p8 }
  0x91   :  { %2597 = shalt.err (!%p2594_p10)
}
  0x92   :  { %s2598_s5 = scalar_lea.vmem %s77_s28, 16  ;;  %s2602_s27 = scalar_lea.vmem %s77_s28, 32 }
  0x93   :  { %p2599_p11 = scmp.ne.s32.totalorder %s77_s28, %s2598_s5  ;;  %p2603_p12 = scmp.lt.s32.totalorder %s77_s28, %s77_s28 }
  0x94   :  { %p2604_p13 = scmp.lt.s32.totalorder %s2602_s27, %s2598_s5 }
  0x96   :  { %p2605_p0 = por %p2604_p13, %p2603_p12 }
  0x98   :  { %p2606_p1 = pnand %p2605_p0, %p2599_p11 }
  0x9a   :  { %2609 = shalt.err (!%p2606_p1)
}
  0x9b   :  { %79 = dma.hbm_to_vmem [thread:$0]  %s3191_s4, 16, %s77_s28, [#allocation10]  }
  0x9c   :  { %s2747_s29 = smov [#allocation14]   ;;  %s2748_s22 = smov [#allocation17]  }
  0x9d   :  { %s98_s3 = sshll.u32 %s2747_s29, 4  ;;  %s118_s9 = sshll.u32 %s2748_s22, 4  ;;  %s99_s3 = int_to_ptr.vmem [resolvable:$true] %s98_s3  ;;  %s119_s9 = int_to_ptr.vmem [resolvable:$true] %s118_s9 }
  0x9e   :  { %s2610_s15 = scalar_lea.hbm %s3193_s6, 16 }
  0x9f   :  { %p2611_p2 = scmp.ne.s32.totalorder %s3193_s6, %s2610_s15  ;;  %p2614_p3 = scmp.lt.u32.totalorder %s2610_s15, %s3193_s6 }
  0xa1   :  { %p2616_p4 = pnand %p2614_p3, %p2611_p2 }
  0xa3   :  { %2619 = shalt.err (!%p2616_p4)
}
  0xa4   :  { %s2620_s4 = scalar_lea.vmem %s99_s3, 16  ;;  %s2624_s28 = scalar_lea.vmem %s99_s3, 32 }
  0xa5   :  { %p2621_p5 = scmp.ne.s32.totalorder %s99_s3, %s2620_s4  ;;  %p2625_p6 = scmp.lt.s32.totalorder %s99_s3, %s99_s3 }
  0xa6   :  { %p2626_p7 = scmp.lt.s32.totalorder %s2624_s28, %s2620_s4 }
  0xa8   :  { %p2627_p8 = por %p2626_p7, %p2625_p6 }
  0xaa   :  { %p2628_p9 = pnand %p2627_p8, %p2621_p5 }
  0xac   :  { %2631 = shalt.err (!%p2628_p9)
}
  0xad   :  { %101 = dma.hbm_to_vmem [thread:$0]  %s3193_s6, 16, %s99_s3, [#allocation13]  }
  0xae   :  { %s2632_s23 = scalar_lea.hbm %s3195_s8, 16 }
  0xaf   :  { %p2633_p10 = scmp.ne.s32.totalorder %s3195_s8, %s2632_s23  ;;  %p2636_p11 = scmp.lt.u32.totalorder %s2632_s23, %s3195_s8 }
  0xb1   :  { %p2638_p12 = pnand %p2636_p11, %p2633_p10 }
  0xb3   :  { %2641 = shalt.err (!%p2638_p12)
}
  0xb4   :  { %s2642_s2 = scalar_lea.vmem %s119_s9, 16  ;;  %s2646_s24 = scalar_lea.vmem %s119_s9, 32 }
  0xb5   :  { %p2643_p13 = scmp.ne.s32.totalorder %s119_s9, %s2642_s2  ;;  %p2647_p0 = scmp.lt.s32.totalorder %s119_s9, %s119_s9 }
  0xb6   :  { %p2648_p1 = scmp.lt.s32.totalorder %s2646_s24, %s2642_s2 }
  0xb8   :  { %p2649_p2 = por %p2648_p1, %p2647_p0 }
  0xba   :  { %p2650_p3 = pnand %p2649_p2, %p2643_p13 }
  0xbc   :  { %2653 = shalt.err (!%p2650_p3)
}
  0xbd   :  { %121 = dma.hbm_to_vmem [thread:$0]  %s3195_s8, 16, %s119_s9, [#allocation16]  }
  0xbe   :  { %s2749_s3 = smov [#allocation20]   ;;  %s2750_s1 = smov [#allocation23]  }
  0xbf   :  { %s140_s22 = sshll.u32 %s2749_s3, 4  ;;  %s162_s30 = sshll.u32 %s2750_s1, 4  ;;  %s141_s22 = int_to_ptr.vmem [resolvable:$true] %s140_s22  ;;  %s163_s30 = int_to_ptr.vmem [resolvable:$true] %s162_s30 }
  0xc0   :  { %s2654_s25 = scalar_lea.hbm %s3197_s10, 16 }
  0xc1   :  { %p2655_p4 = scmp.ne.s32.totalorder %s3197_s10, %s2654_s25  ;;  %p2658_p5 = scmp.lt.u32.totalorder %s2654_s25, %s3197_s10 }
  0xc3   :  { %p2660_p6 = pnand %p2658_p5, %p2655_p4 }
  0xc5   :  { %2663 = shalt.err (!%p2660_p6)
}
  0xc6   :  { %s2664_s8 = scalar_lea.vmem %s141_s22, 16  ;;  %s2668_s9 = scalar_lea.vmem %s141_s22, 32 }
  0xc7   :  { %p2665_p7 = scmp.ne.s32.totalorder %s141_s22, %s2664_s8  ;;  %p2669_p8 = scmp.lt.s32.totalorder %s141_s22, %s141_s22 }
  0xc8   :  { %p2670_p9 = scmp.lt.s32.totalorder %s2668_s9, %s2664_s8 }
  0xca   :  { %p2671_p10 = por %p2670_p9, %p2669_p8 }
  0xcc   :  { %p2672_p11 = pnand %p2671_p10, %p2665_p7 }
  0xce   :  { %2675 = shalt.err (!%p2672_p11)
}
  0xcf   :  { %143 = dma.hbm_to_vmem [thread:$0]  %s3197_s10, 16, %s141_s22, [#allocation19]  }
  0xd0   :  { %s2676_s23 = scalar_lea.hbm %s3199_s12, 16 }
  0xd1   :  { %p2677_p12 = scmp.ne.s32.totalorder %s3199_s12, %s2676_s23  ;;  %p2680_p13 = scmp.lt.u32.totalorder %s2676_s23, %s3199_s12 }
  0xd3   :  { %p2682_p0 = pnand %p2680_p13, %p2677_p12 }
  0xd5   :  { %2685 = shalt.err (!%p2682_p0)
}
  0xd6   :  { %s2686_s2 = scalar_lea.vmem %s163_s30, 16  ;;  %s2690_s24 = scalar_lea.vmem %s163_s30, 32 }
  0xd7   :  { %p2687_p1 = scmp.ne.s32.totalorder %s163_s30, %s2686_s2  ;;  %p2691_p2 = scmp.lt.s32.totalorder %s163_s30, %s163_s30 }
  0xd8   :  { %p2692_p3 = scmp.lt.s32.totalorder %s2690_s24, %s2686_s2 }
  0xda   :  { %p2693_p4 = por %p2692_p3, %p2691_p2 }
  0xdc   :  { %p2694_p5 = pnand %p2693_p4, %p2687_p1 }
  0xde   :  { %2697 = shalt.err (!%p2694_p5)
}
  0xdf   :  { %165 = dma.hbm_to_vmem [thread:$0]  %s3199_s12, 16, %s163_s30, [#allocation22]  }
  0xe0   :  { %2720 = dma.done.wait [#allocation4], 256  }
  0xe1   :  { %2721 = vsyncadd [#allocation4], 4294967040 }
  0xe2   :  { %2722 = dma.done.wait [#allocation7], 32  }
  0xe3   :  { %2723 = vsyncadd [#allocation7], 4294967264 }
  0xe4   :  { %2724 = dma.done.wait [#allocation10], 528  }
  0xe5   :  { %2725 = vsyncadd [#allocation10], 4294966768 }
  0xe6   :  { %2726 = dma.done.wait [#allocation13], 528  }
  0xe7   :  { %2727 = vsyncadd [#allocation13], 4294966768 }
  0xe8   :  { %2728 = dma.done.wait [#allocation16], 32  }
  0xe9   :  { %2729 = vsyncadd [#allocation16], 4294967264 }
  0xea   :  { %2730 = dma.done.wait [#allocation19], 528  }
  0xeb   :  { %2731 = vsyncadd [#allocation19], 4294966768 }
  0xec   :  { %2732 = dma.done.wait [#allocation22], 1040  }
  0xed   :  { %2733 = vsyncadd [#allocation22], 4294966256  ;;  %vm209_vm0 = vcmask 261120   ;;  %v3008_v0 = vld [vmem:[#allocation3] sm:$0xff]  ;;  %v3010_v1 = vld [vmem:[#allocation3 + $0x8] sm:$0xff]  ;;  %v2751_v36 = vmov 0.0  }
  0xee   :  { %v210_v2 = vsel %vm209_vm0, %v3008_v0, 0.0  ;;  %v213_v3 = vsel %vm209_vm0, %v3010_v1, 0.0  ;;  %v253_v14 = vld [vmem:[#allocation9] sm:$0xff]  ;;  %v254_v15 = vld [vmem:[#allocation9 + $0x8] sm:$0xff]  ;;  %v255_v16 = vld [vmem:[#allocation9 + $0x10] sm:$0xff]  ;;  %2186 = vmatprep.subr.mxu0 %v2751_v36  ;;  %vm2752_vm1 = vmmov 0  }
  0xef   :  { %211 = vadd.xlane.f32.xlu0 %v210_v2  ;;  %v2297_v17 = vpack.c.bf16 %v254_v15, %v253_v14  ;;  %v256_v18 = vld [vmem:[#allocation9 + $0x18] sm:$0xff]  ;;  %2188 = vmatprep.mubr.msk.f32.mxu0 %vm2752_vm1, %v2751_v36  ;;  %v2067_v37 = vld [vmem:[#allocation11] ss:$0 sm:$0xff]  ;;  %s2753_s12 = smov 96   ;;  %vm348_vm2 = vcmask 64512   ;;  %s2754_s29 = smov 64  }
  0xf0   :  { %v2301_v19 = vpack.c.bf16 %v256_v18, %v255_v16  ;;  %v2065_v27 = vld [vmem:[#allocation6] ss:$0 sm:$0xff]  ;;  %v2066_v29 = vld [vmem:[#allocation8] ss:$0 sm:$0xff]  ;;  %s2755_s3 = smov 88   ;;  %s2756_s22 = smov 120  }
  0xf1   :  { %2298 = vmatprep.subr.bf16.mxu1 %v2297_v17  ;;  %s2757_s1 = smov 56   ;;  %s2758_s30 = smov 80   ;;  %vm1014_vm3 = vcmask 130112   ;;  %vm1355_vm4 = vcmask 195712   ;;  %vm1696_vm5 = vcmask 261312   ;;  %vm1956_vm6 = vcmask 523264  }
  0xf2   :  { %2300 = vmatpush3.bf16.msra.mxu1 %v2297_v17  ;;  %s2759_s15 = smov 112   ;;  %s2760_s0 = smov 48  }
  0xf3   :  { %214 = vadd.xlane.f32.xlu0 %v213_v3  ;;  %2302 = vmatprep.subr.bf16.mxu1 %v2301_v19  ;;  %s2761_s25 = smov 72   ;;  %s2762_s17 = smov 104  }
  0xf4   :  { %s2763_s18 = smov 40   ;;  %s2764_s4 = smov 16  }
  0xf5   :  { %s2765_s28 = smov 24   ;;  %s2766_s8 = smov [#allocation24]  }
  0xf6   :  { %2304 = vmatpush3.bf16.msra.mxu1 %v2301_v19  ;;  %s2047_s9 = sshll.u32 %s2766_s8, 4  ;;  %s2048_s9 = int_to_ptr.vmem [resolvable:$true] %s2047_s9 }
  0xf7   :  { %2176 = vmatprep.subr.mxu1 %v2751_v36  ;;  %s2698_s19 = scalar_lea.vmem %s2048_s9, 256  ;;  %p2703_p7 = scmp.lt.s32.totalorder %s2048_s9, %s2048_s9 }
  0xf8   :  { %p2699_p6 = scmp.ne.s32.totalorder %s2048_s9, %s2698_s19  ;;  %p2704_p8 = scmp.lt.s32.totalorder %s2698_s19, %s2698_s19 }
  0xfa   :  { %p2705_p9 = por %p2704_p8, %p2703_p7 }
  0xfc   :  { %p2706_p10 = pnand %p2705_p9, %p2699_p6 }
 0x17c   :  { %v212_v4 = vpop.xlane.xlu0 %211 }
 0x17d   :  { %v217_v5 = vmul.f32 0.03125, %v212_v4 }
 0x17f   :  { %v219_v6 = vsub.f32 %v3008_v0, %v217_v5 }
 0x180   :  { %v215_v7 = vpop.xlane.xlu0 %214 }
 0x181   :  { %v218_v8 = vmul.f32 0.03125, %v215_v7  ;;  %v221_v9 = vmul.f32 %v219_v6, %v219_v6 }
 0x183   :  { %v220_v10 = vsub.f32 %v3010_v1, %v218_v8  ;;  %v223_v11 = vsel %vm209_vm0, %v221_v9, 0.0 }
 0x184   :  { %224 = vadd.xlane.f32.xlu1 %v223_v11 }
 0x185   :  { %v222_v12 = vmul.f32 %v220_v10, %v220_v10 }
 0x187   :  { %v226_v13 = vsel %vm209_vm0, %v222_v12, 0.0 }
 0x188   :  { %227 = vadd.xlane.f32.xlu1 %v226_v13 }
 0x211   :  { %v225_v20 = vpop.xlane.xlu1 %224 }
 0x212   :  { %v229_v21 = vmul.f32 0.03125, %v225_v20 }
 0x214   :  { %v231_v22 = vadd.f32 1e-06, %v229_v21 }
 0x215   :  { %v228_v23 = vpop.xlane.xlu1 %227 }
 0x216   :  { %2368 = vrsqrt.f32 %v231_v22  ;;  %v230_v24 = vmul.f32 0.03125, %v228_v23 }
 0x218   :  { %v232_v25 = vadd.f32 1e-06, %v230_v24 }
 0x21a   :  { %2370 = vrsqrt.f32 %v232_v25 }
 0x220   :  { %v2369_v26 = vpop.eup %2368 }
 0x221   :  { %v235_v28 = vmul.f32 %v2369_v26, %v219_v6 }
 0x223   :  { %v243_v30 = vmul.f32 %v2065_v27, %v235_v28 }
 0x224   :  { %v2371_v31 = vpop.eup %2370 }
 0x225   :  { %v236_v32 = vmul.f32 %v2371_v31, %v220_v10  ;;  %v251_v33 = vadd.f32 %v2066_v29, %v243_v30 }
 0x227   :  { %v244_v34 = vmul.f32 %v2065_v27, %v236_v32  ;;  %2173 = vmatprep.mubr.msk.f32.mxu1 %vm209_vm0, %v251_v33 }
 0x229   :  { %v252_v35 = vadd.f32 %v2066_v29, %v244_v34 }
 0x22b   :  { %2174 = vmatmul.mubr.msk.f32.vlgmr.msra.gmra.mrb[0].mxu1 %vm209_vm0, %v252_v35 }
 0x22c   :  { %2178 = vmatprep.mubr.msk.f32.mxu1 %vm2752_vm1, %v2751_v36 }
 0x2fe   :  { %v2175_v38 = vpop.f32.mrb[0].mxu1 }
 0x2ff   :  { %v3028_v39 = vadd.f32 %v2175_v38, %v2067_v37  ;;  %v336_v40 = vpop.f32.mrb[1].mxu1 }
 0x300   :  { %v3030_v41 = vadd.f32 %v2067_v37, %v336_v40 }
 0x301   :  { %424 = vrot.lane.b32.xlu1 %v3028_v39, %s2753_s12 }
 0x302   :  { %346 = vrot.lane.b32.xlu0 %v3030_v41, %s2753_s12 }
 0x373   :  { %v425_v43 = vpop.permute.xlu1 %424 }
 0x374   :  { %v347_v42 = vpop.permute.xlu0 %346 }
 0x375   :  { %2177 = vmatpush3.xpose.msk.msra.mxu1 %vm348_vm2, %v347_v42 }
 0x376   :  { %2181 = vmatprep.subr.mxu1 %v2751_v36 }
 0x378   :  { %2179 = vmatmul.mubr.msk.f32.vlgmr.msra.gmra.mrb[2].mxu1 %vm348_vm2, %v3030_v41 }
 0x379   :  { %2182 = vmatpush3.xpose.msk.msra.mxu1 %vm348_vm2, %v425_v43  ;;  %2183 = vmatprep.mubr.msk.f32.mxu1 %vm2752_vm1, %v2751_v36 }
 0x37a   :  { %2191 = vmatprep.subr.mxu1 %v2751_v36 }
 0x37c   :  { %2184 = vmatmul.mubr.msk.f32.vlgmr.msra.gmra.mrb[4].mxu1 %vm348_vm2, %v3028_v39 }
 0x37d   :  { %2193 = vmatprep.mubr.msk.f32.mxu1 %vm2752_vm1, %v2751_v36 }
 0x44b   :  { %v419_v44 = vpop.f32.mrb[2].mxu1 }
 0x44c   :  { %v2180_v45 = vpop.f32.mrb[3].mxu1  ;;  %v500_v46 = vsel %vm348_vm2, %v419_v44, -inf }
 0x44d   :  { %501 = vmax.xlane.f32.xlu1 %v500_v46 }
 0x44f   :  { %v496_v47 = vpop.f32.mrb[4].mxu1 }
 0x450   :  { %v2185_v48 = vpop.f32.mrb[5].mxu1  ;;  %v503_v49 = vsel %vm348_vm2, %v496_v47, -inf }
 0x451   :  { %504 = vmax.xlane.f32.xlu0 %v503_v49 }
 0x45e   :  { %598 = vrot.lane.b32.xlu1 %v3028_v39, %s2754_s29 }
 0x462   :  { %678 = vrot.lane.b32.xlu1 %v3030_v41, %s2755_s3 }
 0x466   :  { %756 = vrot.lane.b32.xlu1 %v3028_v39, %s2755_s3 }
 0x467   :  { %522 = vrot.lane.b32.xlu0 %v3030_v41, %s2754_s29 }
 0x4da   :  { %v502_v50 = vpop.xlane.xlu1 %501 }
 0x4db   :  { %v506_v51 = vsub.f32 %v419_v44, %v502_v50 }
 0x4dd   :  { %v508_v52 = vmul.f32 1.442695, %v506_v51 }
 0x4de   :  { %v599_v53 = vpop.permute.xlu1 %598  ;;  %v505_v54 = vpop.xlane.xlu0 %504 }
 0x4df   :  { %2372 = vpow2.f32 %v508_v52  ;;  %v507_v55 = vsub.f32 %v496_v47, %v505_v54  ;;  %2192 = vmatpush3.msra.mxu1 %v599_v53 }
 0x4e0   :  { %2201 = vmatprep.subr.mxu1 %v2751_v36 }
 0x4e1   :  { %v510_v56 = vmul.f32 1.442695, %v507_v55 }
 0x4e2   :  { %v523_v57 = vpop.permute.xlu0 %522  ;;  %v679_v62 = vpop.permute.xlu1 %678 }
 0x4e3   :  { %2374 = vpow2.f32 %v510_v56  ;;  %2187 = vmatpush3.msra.mxu0 %v523_v57 }
 0x4e4   :  { %2196 = vmatprep.subr.mxu0 %v2751_v36 }
 0x4e6   :  { %v757_v63 = vpop.permute.xlu1 %756 }
 0x4e9   :  { %v2373_v58 = vpop.eup %2372 }
 0x4ea   :  { %v512_v59 = vsel %vm348_vm2, %v2373_v58, 0.0 }
 0x4eb   :  { %513 = vadd.xlane.f32.xlu0 %v512_v59 }
 0x4ed   :  { %v2375_v60 = vpop.eup %2374 }
 0x4ee   :  { %v515_v61 = vsel %vm348_vm2, %v2375_v60, 0.0 }
 0x4ef   :  { %516 = vadd.xlane.f32.xlu1 %v515_v61 }
 0x500   :  { %754 = vrot.lane.b32.xlu1 %v3028_v39, %s2756_s22 }
 0x501   :  { %676 = vrot.lane.b32.xlu0 %v3030_v41, %s2756_s22 }
 0x578   :  { %v514_v2 = vpop.xlane.xlu0 %513 }
 0x579   :  { %2376 = vrcp.f32 %v514_v2 }
 0x57c   :  { %v517_v3 = vpop.xlane.xlu1 %516  ;;  %v677_v8 = vpop.permute.xlu0 %676 }
 0x57d   :  { %2378 = vrcp.f32 %v517_v3 }
 0x580   :  { %v755_v9 = vpop.permute.xlu1 %754 }
 0x583   :  { %v2377_v4 = vpop.eup %2376 }
 0x584   :  { %v520_v5 = vmul.f32 %v2377_v4, %v2373_v58 }
 0x586   :  { %2189 = vmatmul.mubr.msk.f32.vlgmr.msra.gmra.mrb[0].mxu0 %vm348_vm2, %v520_v5 }
 0x587   :  { %v2379_v6 = vpop.eup %2378  ;;  %2197 = vmatpush3.xpose.msk.msra.mxu0 %vm348_vm2, %v679_v62  ;;  %2198 = vmatprep.mubr.msk.f32.mxu0 %vm2752_vm1, %v2751_v36 }
 0x588   :  { %v521_v7 = vmul.f32 %v2379_v6, %v2375_v60  ;;  %2206 = vmatprep.subr.mxu0 %v2751_v36 }
 0x58a   :  { %2194 = vmatmul.mubr.msk.f32.vlgmr.msra.gmra.mrb[6].mxu1 %vm348_vm2, %v521_v7  ;;  %2199 = vmatmul.mubr.msk.f32.vlgmr.msra.gmra.mrb[2].mxu0 %vm348_vm2, %v677_v8 }
 0x58b   :  { %2202 = vmatpush3.xpose.msk.msra.mxu1 %vm348_vm2, %v757_v63  ;;  %2203 = vmatprep.mubr.msk.f32.mxu1 %vm2752_vm1, %v2751_v36 }
 0x58c   :  { %2211 = vmatprep.subr.mxu1 %v2751_v36  ;;  %2208 = vmatprep.mubr.msk.f32.mxu0 %vm2752_vm1, %v2751_v36 }
 0x58e   :  { %2204 = vmatmul.mubr.msk.f32.vlgmr.msra.gmra.mrb[8].mxu1 %vm348_vm2, %v755_v9 }
 0x58f   :  { %2213 = vmatprep.mubr.msk.f32.mxu1 %vm2752_vm1, %v2751_v36 }
 0x659   :  { %v594_v10 = vpop.f32.mrb[0].mxu0 }
 0x65a   :  { %674 = vst.msk [vmem:[#allocation2] sm:$0xff] %vm348_vm2, %v594_v10  ;;  %v2190_v11 = vpop.f32.mrb[1].mxu0 }
 0x65d   :  { %v670_v12 = vpop.f32.mrb[6].mxu1  ;;  %v750_v13 = vpop.f32.mrb[2].mxu0 }
 0x65e   :  { %675 = vst.msk [vmem:[#allocation2 + $0x8] sm:$0xff] %vm348_vm2, %v670_v12  ;;  %v2195_v14 = vpop.f32.mrb[7].mxu1  ;;  %v2200_v15 = vpop.f32.mrb[3].mxu0  ;;  %v832_v16 = vsel %vm348_vm2, %v750_v13, -inf }
 0x65f   :  { %833 = vmax.xlane.f32.xlu0 %v832_v16 }
 0x661   :  { %v828_v17 = vpop.f32.mrb[8].mxu1 }
 0x662   :  { %v2205_v18 = vpop.f32.mrb[9].mxu1  ;;  %v835_v19 = vsel %vm348_vm2, %v828_v17, -inf }
 0x663   :  { %836 = vmax.xlane.f32.xlu1 %v835_v19 }
 0x674   :  { %930 = vrot.lane.b32.xlu1 %v3028_v39, %s2757_s1 }
 0x675   :  { %854 = vrot.lane.b32.xlu0 %v3030_v41, %s2757_s1 }
 0x678   :  { %1019 = vrot.lane.b32.xlu1 %v3030_v41, %s2758_s30 }
 0x67c   :  { %1097 = vrot.lane.b32.xlu1 %v3028_v39, %s2758_s30 }
 0x680   :  { %1095 = vrot.lane.b32.xlu1 %v3028_v39, %s2759_s15 }
 0x6ec   :  { %v834_v20 = vpop.xlane.xlu0 %833 }
 0x6ed   :  { %v838_v21 = vsub.f32 %v750_v13, %v834_v20 }
 0x6ef   :  { %v840_v22 = vmul.f32 1.442695, %v838_v21 }
 0x6f0   :  { %v855_v23 = vpop.permute.xlu0 %854  ;;  %v837_v24 = vpop.xlane.xlu1 %836 }
 0x6f1   :  { %2380 = vpow2.f32 %v840_v22  ;;  %v839_v25 = vsub.f32 %v828_v17, %v837_v24  ;;  %2207 = vmatpush3.msra.mxu0 %v855_v23 }
 0x6f2   :  { %2216 = vmatprep.subr.mxu0 %v2751_v36 }
 0x6f3   :  { %v842_v26 = vmul.f32 1.442695, %v839_v25 }
 0x6f4   :  { %v931_v27 = vpop.permute.xlu1 %930 }
 0x6f5   :  { %2382 = vpow2.f32 %v842_v26  ;;  %2212 = vmatpush3.msra.mxu1 %v931_v27 }
 0x6f6   :  { %2221 = vmatprep.subr.mxu1 %v2751_v36 }
 0x6f8   :  { %v1020_v34 = vpop.permute.xlu1 %1019 }
 0x6fb   :  { %v2381_v28 = vpop.eup %2380 }
 0x6fc   :  { %v844_v29 = vsel %vm348_vm2, %v2381_v28, 0.0  ;;  %v1098_v40 = vpop.permute.xlu1 %1097 }
 0x6fd   :  { %845 = vadd.xlane.f32.xlu0 %v844_v29 }
 0x6ff   :  { %v2383_v30 = vpop.eup %2382 }
 0x700   :  { %v847_v31 = vsel %vm348_vm2, %v2383_v30, 0.0  ;;  %v1096_v44 = vpop.permute.xlu1 %1095 }
 0x701   :  { %848 = vadd.xlane.f32.xlu0 %v847_v31 }
 0x717   :  { %1017 = vrot.lane.b32.xlu0 %v3030_v41, %s2759_s15 }
 0x78a   :  { %v846_v32 = vpop.xlane.xlu0 %845 }
 0x78b   :  { %2384 = vrcp.f32 %v846_v32 }
 0x78e   :  { %v849_v33 = vpop.xlane.xlu0 %848 }
 0x78f   :  { %2386 = vrcp.f32 %v849_v33 }
 0x792   :  { %v1018_v43 = vpop.permute.xlu0 %1017 }
 0x795   :  { %v2385_v35 = vpop.eup %2384 }
 0x796   :  { %v852_v37 = vmul.f32 %v2385_v35, %v2381_v28 }
 0x798   :  { %2209 = vmatmul.mubr.msk.f32.vlgmr.msra.gmra.mrb[4].mxu0 %vm348_vm2, %v852_v37 }
 0x799   :  { %v2387_v38 = vpop.eup %2386  ;;  %2217 = vmatpush3.xpose.msk.msra.mxu0 %vm348_vm2, %v1020_v34  ;;  %2218 = vmatprep.mubr.msk.f32.mxu0 %vm2752_vm1, %v2751_v36 }
 0x79a   :  { %v853_v42 = vmul.f32 %v2387_v38, %v2383_v30  ;;  %2226 = vmatprep.subr.mxu0 %v2751_v36 }
 0x79c   :  { %2214 = vmatmul.mubr.msk.f32.vlgmr.msra.gmra.mrb[10].mxu1 %vm348_vm2, %v853_v42  ;;  %2219 = vmatmul.mubr.msk.f32.vlgmr.msra.gmra.mrb[6].mxu0 %vm348_vm2, %v1018_v43 }
 0x79d   :  { %2222 = vmatpush3.xpose.msk.msra.mxu1 %vm348_vm2, %v1098_v40  ;;  %2223 = vmatprep.mubr.msk.f32.mxu1 %vm2752_vm1, %v2751_v36 }
 0x79e   :  { %2231 = vmatprep.subr.mxu1 %v2751_v36  ;;  %2228 = vmatprep.mubr.msk.f32.mxu0 %vm2752_vm1, %v2751_v36 }
 0x7a0   :  { %2224 = vmatmul.mubr.msk.f32.vlgmr.msra.gmra.mrb[12].mxu1 %vm348_vm2, %v1096_v44 }
 0x7a1   :  { %2233 = vmatprep.mubr.msk.f32.mxu1 %vm2752_vm1, %v2751_v36 }
 0x86b   :  { %v3104_v45 = vpop.f32.mrb[4].mxu0 }
 0x86c   :  { %v2210_v46 = vpop.f32.mrb[5].mxu0 }
 0x86f   :  { %v3106_v47 = vpop.f32.mrb[10].mxu1  ;;  %v1091_v48 = vpop.f32.mrb[6].mxu0 }
 0x870   :  { %v2215_v49 = vpop.f32.mrb[11].mxu1  ;;  %v2220_v50 = vpop.f32.mrb[7].mxu0  ;;  %v1173_v51 = vsel %vm348_vm2, %v1091_v48, -inf }
 0x871   :  { %1174 = vmax.xlane.f32.xlu0 %v1173_v51  ;;  %v1703_v50 = vld [vmem:[#allocation12 + $0x10] sm:$0xff]  ;;  %v1704_v51 = vld [vmem:[#allocation12 + $0x18] sm:$0xff] }
 0x873   :  { %v1169_v52 = vpop.f32.mrb[12].mxu1 }
 0x874   :  { %v2225_v53 = vpop.f32.mrb[13].mxu1  ;;  %v1176_v54 = vsel %vm348_vm2, %v1169_v52, -inf }
 0x875   :  { %1177 = vmax.xlane.f32.xlu1 %v1176_v54 }
 0x886   :  { %1271 = vrot.lane.b32.xlu1 %v3028_v39, %s2760_s0 }
 0x887   :  { %1195 = vrot.lane.b32.xlu0 %v3030_v41, %s2760_s0 }
 0x88a   :  { %1360 = vrot.lane.b32.xlu1 %v3030_v41, %s2761_s25 }
 0x88e   :  { %1438 = vrot.lane.b32.xlu1 %v3028_v39, %s2761_s25 }
 0x892   :  { %1436 = vrot.lane.b32.xlu1 %v3028_v39, %s2762_s17 }
 0x8fe   :  { %v1175_v55 = vpop.xlane.xlu0 %1174 }
 0x8ff   :  { %v1179_v56 = vsub.f32 %v1091_v48, %v1175_v55  ;;  %v1701_v48 = vld [vmem:[#allocation12] sm:$0xff] }
 0x901   :  { %v1181_v57 = vmul.f32 1.442695, %v1179_v56 }
 0x902   :  { %v1196_v58 = vpop.permute.xlu0 %1195  ;;  %v1178_v59 = vpop.xlane.xlu1 %1177 }
 0x903   :  { %2388 = vpow2.f32 %v1181_v57  ;;  %v1180_v60 = vsub.f32 %v1169_v52, %v1178_v59  ;;  %2227 = vmatpush3.msra.mxu0 %v1196_v58  ;;  %v2309_v52 = vpack.c.bf16 %v1704_v51, %v1703_v50  ;;  %v2099_v50 = vld [vmem:[#allocation20] ss:$0 sm:$0xff] }
 0x904   :  { %2236 = vmatprep.subr.mxu0 %v2751_v36 }
 0x905   :  { %v1183_v61 = vmul.f32 1.442695, %v1180_v60 }
 0x906   :  { %v1272_v62 = vpop.permute.xlu1 %1271 }
 0x907   :  { %2390 = vpow2.f32 %v1183_v61  ;;  %2232 = vmatpush3.msra.mxu1 %v1272_v62  ;;  %v2094_v61 = vld [vmem:[#allocation14] ss:$0 sm:$0xff] }
 0x908   :  { %2241 = vmatprep.subr.mxu1 %v2751_v36 }
 0x90a   :  { %v1361_v7 = vpop.permute.xlu1 %1360 }
 0x90d   :  { %v2389_v63 = vpop.eup %2388 }
 0x90e   :  { %v1185_v2 = vsel %vm348_vm2, %v2389_v63, 0.0  ;;  %v1439_v11 = vpop.permute.xlu1 %1438 }
 0x90f   :  { %1186 = vadd.xlane.f32.xlu0 %v1185_v2 }
 0x911   :  { %v2391_v3 = vpop.eup %2390 }
 0x912   :  { %v1188_v4 = vsel %vm348_vm2, %v2391_v3, 0.0  ;;  %v1437_v14 = vpop.permute.xlu1 %1436 }
 0x913   :  { %1189 = vadd.xlane.f32.xlu0 %v1188_v4 }
 0x929   :  { %1358 = vrot.lane.b32.xlu0 %v3030_v41, %s2762_s17 }
 0x99c   :  { %v1187_v5 = vpop.xlane.xlu0 %1186 }
 0x99d   :  { %2392 = vrcp.f32 %v1187_v5 }
 0x9a0   :  { %v1190_v6 = vpop.xlane.xlu0 %1189 }
 0x9a1   :  { %2394 = vrcp.f32 %v1190_v6 }
 0x9a4   :  { %v1359_v13 = vpop.permute.xlu0 %1358 }
 0x9a7   :  { %v2393_v8 = vpop.eup %2392 }
 0x9a8   :  { %v1193_v9 = vmul.f32 %v2393_v8, %v2389_v63 }
 0x9aa   :  { %2229 = vmatmul.mubr.msk.f32.vlgmr.msra.gmra.mrb[8].mxu0 %vm348_vm2, %v1193_v9 }
 0x9ab   :  { %v2395_v10 = vpop.eup %2394  ;;  %2237 = vmatpush3.xpose.msk.msra.mxu0 %vm348_vm2, %v1361_v7  ;;  %2238 = vmatprep.mubr.msk.f32.mxu0 %vm2752_vm1, %v2751_v36 }
 0x9ac   :  { %v1194_v12 = vmul.f32 %v2395_v10, %v2391_v3  ;;  %2246 = vmatprep.subr.mxu0 %v2751_v36 }
 0x9ae   :  { %2234 = vmatmul.mubr.msk.f32.vlgmr.msra.gmra.mrb[14].mxu1 %vm348_vm2, %v1194_v12  ;;  %2239 = vmatmul.mubr.msk.f32.vlgmr.msra.gmra.mrb[10].mxu0 %vm348_vm2, %v1359_v13 }
 0x9af   :  { %2242 = vmatpush3.xpose.msk.msra.mxu1 %vm348_vm2, %v1439_v11  ;;  %2243 = vmatprep.mubr.msk.f32.mxu1 %vm2752_vm1, %v2751_v36 }
 0x9b0   :  { %2251 = vmatprep.subr.mxu1 %v2751_v36  ;;  %2248 = vmatprep.mubr.msk.f32.mxu0 %vm2752_vm1, %v2751_v36 }
 0x9b2   :  { %2244 = vmatmul.mubr.msk.f32.vlgmr.msra.gmra.mrb[16].mxu1 %vm348_vm2, %v1437_v14 }
 0x9b3   :  { %2253 = vmatprep.mubr.msk.f32.mxu1 %vm2752_vm1, %v2751_v36 }
 0xa7d   :  { %v1267_v15 = vpop.f32.mrb[8].mxu0 }
 0xa7e   :  { %v2230_v16 = vpop.f32.mrb[9].mxu0 }
 0xa7f   :  { %v1839_v16 = vld [vmem:[#allocation18] sm:$0xff] }
 0xa81   :  { %v1343_v17 = vpop.f32.mrb[14].mxu1  ;;  %v1432_v18 = vpop.f32.mrb[10].mxu0 }
 0xa82   :  { %v2235_v19 = vpop.f32.mrb[15].mxu1  ;;  %v2240_v20 = vpop.f32.mrb[11].mxu0  ;;  %v1514_v21 = vsel %vm348_vm2, %v1432_v18, -inf }
 0xa83   :  { %1515 = vmax.xlane.f32.xlu0 %v1514_v21  ;;  %v1841_v19 = vld [vmem:[#allocation18 + $0x10] sm:$0xff]  ;;  %v1842_v20 = vld [vmem:[#allocation18 + $0x18] sm:$0xff] }
 0xa84   :  { %v2317_v21 = vpack.c.bf16 %v1842_v20, %v1841_v19 }
 0xa85   :  { %v1510_v22 = vpop.f32.mrb[16].mxu1 }
 0xa86   :  { %v2245_v23 = vpop.f32.mrb[17].mxu1  ;;  %v1517_v24 = vsel %vm348_vm2, %v1510_v22, -inf }
 0xa87   :  { %1518 = vmax.xlane.f32.xlu1 %v1517_v24 }
 0xa98   :  { %1612 = vrot.lane.b32.xlu1 %v3028_v39, %s2763_s18 }
 0xa9c   :  { %1008 = vrot.lane.b32.xlu1 %v3104_v45, %s2740_s16 }
 0xaa0   :  { %1010 = vrot.lane.b32.xlu1 %v3106_v47, %s2740_s16 }
 0xaa4   :  { %1351 = vrot.lane.b32.xlu1 %v1343_v17, %s2764_s4  ;;  %v1840_v17 = vld [vmem:[#allocation18 + $0x8] sm:$0xff] }
 0xb10   :  { %v1516_v36 = vpop.xlane.xlu0 %1515 }
 0xb11   :  { %v1520_v25 = vsub.f32 %v1432_v18, %v1516_v36  ;;  %v2313_v18 = vpack.c.bf16 %v1840_v17, %v1839_v16 }
 0xb13   :  { %v1522_v26 = vmul.f32 1.442695, %v1520_v25 }
 0xb14   :  { %v1519_v27 = vpop.xlane.xlu1 %1518 }
 0xb15   :  { %2396 = vpow2.f32 %v1522_v26  ;;  %v1521_v28 = vsub.f32 %v1510_v22, %v1519_v27 }
 0xb17   :  { %v1524_v29 = vmul.f32 1.442695, %v1521_v28  ;;  %v2097_v28 = vld [vmem:[#allocation15] ss:$0 sm:$0xff] }
 0xb18   :  { %v1613_v30 = vpop.permute.xlu1 %1612 }
 0xb19   :  { %2398 = vpow2.f32 %v1524_v29  ;;  %2252 = vmatpush3.msra.mxu1 %v1613_v30  ;;  %v2098_v30 = vld [vmem:[#allocation17] ss:$0 sm:$0xff] }
 0xb1a   :  { %2314 = vmatprep.subr.bf16.mxu1 %v2313_v18 }
 0xb1c   :  { %v1009_v39 = vpop.permute.xlu1 %1008 }
 0xb1d   :  { %1015 = vst.msk [vmem:[#allocation2] sm:$0xff] %vm1014_vm3, %v1009_v39 }
 0xb1f   :  { %v2397_v31 = vpop.eup %2396 }
 0xb20   :  { %v1011_v32 = vpop.permute.xlu1 %1010  ;;  %v1526_v33 = vsel %vm348_vm2, %v2397_v31, 0.0 }
 0xb21   :  { %1016 = vst.msk [vmem:[#allocation2 + $0x8] sm:$0xff] %vm1014_vm3, %v1011_v32  ;;  %1527 = vadd.xlane.f32.xlu0 %v1526_v33 }
 0xb23   :  { %v2399_v34 = vpop.eup %2398 }
 0xb24   :  { %v1352_v35 = vpop.permute.xlu1 %1351  ;;  %v1529_v37 = vsel %vm348_vm2, %v2399_v34, 0.0 }
 0xb25   :  { %1357 = vst.msk [vmem:[#allocation2 + $0x8] sm:$0xff] %vm1355_vm4, %v1352_v35  ;;  %1530 = vadd.xlane.f32.xlu0 %v1529_v37  ;;  %v1941_v37 = vld [vmem:[#allocation21] sm:$0xff] }
 0xb3b   :  { %1536 = vrot.lane.b32.xlu0 %v3030_v41, %s2763_s18  ;;  %v1702_v41 = vld [vmem:[#allocation12 + $0x8] sm:$0xff] }
 0xb3c   :  { %v2305_v49 = vpack.c.bf16 %v1702_v41, %v1701_v48  ;;  %v1947_v48 = vld [vmem:[#allocation21 + $0x30] sm:$0xff]  ;;  %v1948_v41 = vld [vmem:[#allocation21 + $0x38] sm:$0xff] }
 0xb3f   :  { %1349 = vrot.lane.b32.xlu0 %v1267_v15, %s2764_s4 }
 0xbae   :  { %v1528_v38 = vpop.xlane.xlu0 %1527 }
 0xbaf   :  { %2400 = vrcp.f32 %v1528_v38  ;;  %v1942_v38 = vld [vmem:[#allocation21 + $0x8] sm:$0xff] }
 0xbb2   :  { %v1531_v40 = vpop.xlane.xlu0 %1530 }
 0xbb3   :  { %2402 = vrcp.f32 %v1531_v40  ;;  %v2321_v40 = vpack.c.bf16 %v1942_v38, %v1941_v37 }
 0xbb6   :  { %v1537_v42 = vpop.permute.xlu0 %1536 }
 0xbb7   :  { %2247 = vmatpush3.msra.mxu0 %v1537_v42  ;;  %v1943_v42 = vld [vmem:[#allocation21 + $0x10] sm:$0xff] }
 0xbb8   :  { %2306 = vmatprep.subr.bf16.mxu0 %v2305_v49 }
 0xbb9   :  { %v2401_v43 = vpop.eup %2400 }
 0xbba   :  { %v1534_v44 = vmul.f32 %v2401_v43, %v2397_v31  ;;  %v1350_v45 = vpop.permute.xlu0 %1349  ;;  %v1944_v43 = vld [vmem:[#allocation21 + $0x18] sm:$0xff] }
 0xbbb   :  { %1356 = vst.msk [vmem:[#allocation2] sm:$0xff] %vm1355_vm4, %v1350_v45  ;;  %v1945_v45 = vld [vmem:[#allocation21 + $0x20] sm:$0xff] }
 0xbbc   :  { %2249 = vmatmul.mubr.msk.f32.vlgmr.msra.gmra.mrb[12].mxu0 %vm348_vm2, %v1534_v44  ;;  %v2325_v44 = vpack.c.bf16 %v1944_v43, %v1943_v42 }
 0xbbd   :  { %v2403_v46 = vpop.eup %2402  ;;  %2308 = vmatpush3.bf16.msra.mxu0 %v2305_v49  ;;  %v2333_v49 = vpack.c.bf16 %v1948_v41, %v1947_v48 }
 0xbbe   :  { %v1535_v47 = vmul.f32 %v2403_v46, %v2399_v34  ;;  %2310 = vmatprep.subr.bf16.mxu0 %v2309_v52  ;;  %v1946_v46 = vld [vmem:[#allocation21 + $0x28] sm:$0xff] }
 0xbc0   :  { %2254 = vmatmul.mubr.msk.f32.vlgmr.msra.gmra.mrb[18].mxu1 %vm348_vm2, %v1535_v47  ;;  %v2329_v47 = vpack.c.bf16 %v1946_v46, %v1945_v45 }
 0xbc1   :  { %2312 = vmatpush3.bf16.msra.mxu0 %v2309_v52  ;;  %2316 = vmatpush3.bf16.msra.mxu1 %v2313_v18 }
 0xbc2   :  { %2318 = vmatprep.subr.bf16.mxu1 %v2317_v21  ;;  %2322 = vmatprep.subr.bf16.mxu0 %v2321_v40 }
 0xbc5   :  { %2320 = vmatpush3.bf16.msra.mxu1 %v2317_v21 }
 0xc8f   :  { %v1608_v53 = vpop.f32.mrb[12].mxu0 }
 0xc90   :  { %1690 = vrot.lane.b32.xlu0 %v1608_v53, %s2765_s28  ;;  %v2250_v54 = vpop.f32.mrb[13].mxu0 }
 0xc93   :  { %v1684_v55 = vpop.f32.mrb[18].mxu1 }
 0xc94   :  { %1692 = vrot.lane.b32.xlu1 %v1684_v55, %s2765_s28  ;;  %v2255_v56 = vpop.f32.mrb[19].mxu1 }
 0xd02   :  { %v1691_v57 = vpop.permute.xlu0 %1690 }
 0xd03   :  { %1697 = vst.msk [vmem:[#allocation2] sm:$0xff] %vm1696_vm5, %v1691_v57 }
 0xd06   :  { %v1693_v58 = vpop.permute.xlu1 %1692 }
 0xd07   :  { %1698 = vst.msk [vmem:[#allocation2 + $0x8] sm:$0xff] %vm1696_vm5, %v1693_v58 }
 0xd0a   :  { %v1699_v59 = vld [vmem:[#allocation2] sm:$0xff] }
 0xd0b   :  { %2264 = vmatprep.mubr.msk.f32.mxu0 %vm209_vm0, %v1699_v59 }
 0xd0e   :  { %v1700_v60 = vld [vmem:[#allocation2 + $0x8] sm:$0xff] }
 0xd0f   :  { %2265 = vmatmul.mubr.msk.f32.vlgmr.msra.gmra.mrb[14].mxu0 %vm209_vm0, %v1700_v60 }
 0xd10   :  { %2324 = vmatpush3.bf16.msra.mxu0 %v2321_v40 }
 0xd11   :  { %2326 = vmatprep.subr.bf16.mxu0 %v2325_v44 }
 0xd14   :  { %2328 = vmatpush3.bf16.msra.mxu0 %v2325_v44 }
 0xd15   :  { %2330 = vmatprep.subr.bf16.mxu0 %v2329_v47 }
 0xd18   :  { %2332 = vmatpush3.bf16.msra.mxu0 %v2329_v47 }
 0xd19   :  { %2334 = vmatprep.subr.bf16.mxu0 %v2333_v49 }
 0xd1c   :  { %2336 = vmatpush3.bf16.msra.mxu0 %v2333_v49 }
 0xde2   :  { %v2266_v62 = vpop.f32.mrb[14].mxu0 }
 0xde3   :  { %v1790_v63 = vadd.f32 %v2266_v62, %v2094_v61  ;;  %v1784_v2 = vpop.f32.mrb[15].mxu0 }
 0xde4   :  { %v1785_v3 = vadd.f32 %v2094_v61, %v1784_v2 }
 0xde5   :  { %v3153_v4 = vadd.f32 %v1790_v63, %v3010_v1 }
 0xde6   :  { %v3156_v5 = vadd.f32 %v1785_v3, %v3008_v0  ;;  %v2102_v3 = vld [vmem:[#allocation23] ss:$0 sm:$0xff] }
 0xde7   :  { %v1800_v6 = vsel %vm209_vm0, %v3153_v4, 0.0 }
 0xde8   :  { %1801 = vadd.xlane.f32.xlu1 %v1800_v6  ;;  %v1797_v7 = vsel %vm209_vm0, %v3156_v5, 0.0 }
 0xde9   :  { %1798 = vadd.xlane.f32.xlu0 %v1797_v7 }
 0xe75   :  { %v1802_v8 = vpop.xlane.xlu1 %1801 }
 0xe76   :  { %v1804_v9 = vmul.f32 0.03125, %v1802_v8  ;;  %v1799_v10 = vpop.xlane.xlu0 %1798 }
 0xe77   :  { %v1803_v11 = vmul.f32 0.03125, %v1799_v10 }
 0xe78   :  { %v1806_v12 = vsub.f32 %v3153_v4, %v1804_v9 }
 0xe79   :  { %v1805_v1 = vsub.f32 %v3156_v5, %v1803_v11 }
 0xe7a   :  { %v1808_v14 = vmul.f32 %v1806_v12, %v1806_v12 }
 0xe7b   :  { %v1807_v13 = vmul.f32 %v1805_v1, %v1805_v1 }
 0xe7c   :  { %v1812_v15 = vsel %vm209_vm0, %v1808_v14, 0.0 }
 0xe7d   :  { %v1809_v0 = vsel %vm209_vm0, %v1807_v13, 0.0 }
 0xe7e   :  { %1810 = vadd.xlane.f32.xlu0 %v1809_v0 }
 0xe82   :  { %1813 = vadd.xlane.f32.xlu0 %v1812_v15 }
 0xf0b   :  { %v1811_v22 = vpop.xlane.xlu0 %1810 }
 0xf0c   :  { %v1815_v23 = vmul.f32 0.03125, %v1811_v22 }
 0xf0e   :  { %v1817_v24 = vadd.f32 1e-06, %v1815_v23 }
 0xf0f   :  { %v1814_v36 = vpop.xlane.xlu0 %1813 }
 0xf10   :  { %2404 = vrsqrt.f32 %v1817_v24  ;;  %v1816_v25 = vmul.f32 0.03125, %v1814_v36 }
 0xf12   :  { %v1818_v26 = vadd.f32 1e-06, %v1816_v25 }
 0xf14   :  { %2406 = vrsqrt.f32 %v1818_v26 }
 0xf1a   :  { %v2405_v27 = vpop.eup %2404 }
 0xf1b   :  { %v1821_v29 = vmul.f32 %v2405_v27, %v1805_v1 }
 0xf1d   :  { %v1829_v39 = vmul.f32 %v2097_v28, %v1821_v29 }
 0xf1e   :  { %v2407_v31 = vpop.eup %2406 }
 0xf1f   :  { %v1822_v32 = vmul.f32 %v2407_v31, %v1806_v12  ;;  %v1837_v33 = vadd.f32 %v2098_v30, %v1829_v39 }
 0xf21   :  { %v1830_v34 = vmul.f32 %v2097_v28, %v1822_v32  ;;  %2275 = vmatprep.mubr.msk.f32.mxu1 %vm209_vm0, %v1837_v33 }
 0xf23   :  { %v1838_v35 = vadd.f32 %v2098_v30, %v1830_v34 }
 0xf25   :  { %2276 = vmatmul.mubr.msk.f32.vlgmr.msra.gmra.mrb[20].mxu1 %vm209_vm0, %v1838_v35 }
 0xff8   :  { %v2277_v51 = vpop.f32.mrb[20].mxu1 }
 0xff9   :  { %v1928_v52 = vadd.f32 %v2277_v51, %v2099_v50  ;;  %v1922_v53 = vpop.f32.mrb[21].mxu1 }
 0xffa   :  { %v1923_v54 = vadd.f32 %v2099_v50, %v1922_v53 }
 0xffb   :  { %v1934_v55 = vmul.f32 0.70710677, %v1928_v52  ;;  %v1932_v62 = vmul.f32 0.5, %v1928_v52 }
 0xffc   :  { %v1933_v56 = vmul.f32 0.70710677, %v1923_v54  ;;  %v1931_v60 = vmul.f32 0.5, %v1923_v54 }
 0xffd   :  { %2408 = verf.f32 %v1934_v55 }
 0xffe   :  { %2410 = verf.f32 %v1933_v56 }
0x1007   :  { %v2409_v57 = vpop.eup %2408 }
0x1008   :  { %v2411_v58 = vpop.eup %2410  ;;  %v1938_v59 = vadd.f32 1.0, %v2409_v57 }
0x1009   :  { %v1937_v61 = vadd.f32 1.0, %v2411_v58 }
0x100a   :  { %v1940_v2 = vmul.f32 %v1938_v59, %v1932_v62 }
0x100b   :  { %v1939_v63 = vmul.f32 %v1937_v61, %v1931_v60 }
0x100d   :  { %2294 = vmatprep.mubr.msk.f32.mxu0 %vm1956_vm6, %v1939_v63 }
0x100e   :  { %2295 = vmatmul.mubr.msk.f32.vlgmr.msra.gmra.mrb[16].mxu0 %vm1956_vm6, %v1940_v2 }
0x10e1   :  { %v2296_v6 = vpop.f32.mrb[16].mxu0 }
0x10e2   :  { %v2035_v7 = vadd.f32 %v2296_v6, %v2102_v3  ;;  %v2029_v8 = vpop.f32.mrb[17].mxu0 }
0x10e3   :  { %v2030_v9 = vadd.f32 %v2102_v3, %v2029_v8 }
0x10e4   :  { %v2039_v10 = vadd.f32 %v2035_v7, %v3153_v4 }
0x10e5   :  { %v2038_v11 = vadd.f32 %v2030_v9, %v3156_v5 }
0x10e6   :  { %2041 = vst.msk [vmem:[#allocation24 + $0x8] sm:$0xff] %vm209_vm0, %v2039_v10 }
0x10e7   :  { %2040 = vst.msk [vmem:[#allocation24] sm:$0xff] %vm209_vm0, %v2038_v11 }
0x10e8   :  { %2709 = shalt.err (!%p2706_p10)
}
0x10e9   :  { %s2710_s20 = scalar_lea.hbm %s3200_s13, 256 }
0x10ea   :  { %p2711_p11 = scmp.ne.s32.totalorder %s3200_s13, %s2710_s20  ;;  %p2714_p12 = scmp.lt.u32.totalorder %s2710_s20, %s3200_s13 }
0x10ec   :  { %p2716_p13 = pnand %p2714_p12, %p2711_p11 }
0x10ee   :  { %2719 = shalt.err (!%p2716_p13)
}
0x10ef   :  { %2053 = dma.vmem_to_hbm [thread:$0]  %s2048_s9, 256, %s3200_s13, [#allocation5], %s2739_s26, %s2739_s26, %s2740_s16  }
0x10f0   :  { %2734 = dma.done.wait [#allocation5], 256  }
0x10f1   :  { %2735 = vsyncadd [#allocation5], 4294967040 }
0x10f2   :  { %2057 = vsyncpa [#allocation4], 1 }
0x10f3   :  { %2058 = vsyncpa [#allocation7], 1 }
0x10f4   :  { %2059 = vsyncpa [#allocation10], 1 }
0x10f5   :  { %2060 = vsyncpa [#allocation13], 1 }
0x10f6   :  { %2061 = vsyncpa [#allocation16], 1 }
0x10f7   :  { %2062 = vsyncpa [#allocation19], 1 }
0x10f8   :  { %2063 = vsyncpa [#allocation22], 1 }
0x10f9   :  { %2064 = vsyncpa [#allocation5], 1 }

</bundles_post_ra>
